<compile_context>
chip_gen: v6e
topology: v6e:2x2x1
jax: 0.10.0
libtpu: 0.0.40
codegen_flags: <defaults>
</compile_context>

<pallas_src>
import functools

import jax
import jax.numpy as jnp
from jax.experimental import pallas as pl
from jax.experimental.pallas import tpu as pltpu  # noqa: F401  (not needed at this size)

# ---------------- model hyperparameters (small, deterministic) ----------------
CONTEXT_LENGTH = 8       # context_lenght in the PyTorch source
VOCAB_SIZE = 64
NHIDDEN = 64             # == embed_size
NHEADS = 4
NLAYERS = 2
HEAD_DIM = NHIDDEN // NHEADS
FF_DIM = 4 * NHIDDEN
LN_EPS = 1e-5
VPAD = 128               # lm_head / output padded to a full 128-lane width


# -------------------------------- Pallas kernel --------------------------------
def _layer_norm(x, gamma, beta):
    mu = jnp.mean(x, axis=-1, keepdims=True)
    var = jnp.mean((x - mu) ** 2, axis=-1, keepdims=True)
    return (x - mu) * jax.lax.rsqrt(var + LN_EPS) * gamma + beta


def bigram_kernel(nlayers, nheads, batch, seqlen,
                  idx_ref, emb_ref, pos_ref, ln_ref,
                  wqkv_ref, bqkv_ref, wo_ref, bo_ref,
                  w1_ref, b1_ref, w2_ref, b2_ref,
                  lnf_ref, wlm_ref, blm_ref, out_ref):
    bt = batch * seqlen
    vocab, d = emb_ref.shape
    hd = d // nheads
    bf16 = jnp.bfloat16

    # ---- token embedding gather (one-hot @ table on the MXU) + pre-tiled pos embedding ----
    ids = idx_ref[...]                                              # (BT, 1) int32
    vocab_iota = jax.lax.broadcasted_iota(jnp.int32, (bt, vocab), 1)
    onehot = (ids == vocab_iota).astype(bf16)                       # exact 0/1 in bf16
    tok = jnp.dot(onehot, emb_ref[...], preferred_element_type=jnp.float32)
    x = tok + pos_ref[...]                                          # (BT, D) f32

    # ---- additive block-diagonal causal mask bias, computed once before the layer loop ----
    ri = jax.lax.broadcasted_iota(jnp.int32, (bt, bt), 0)
    ci = jax.lax.broadcasted_iota(jnp.int32, (bt, bt), 1)
    if seqlen & (seqlen - 1) == 0:                                  # power of two -> bit ops
        sh = seqlen.bit_length() - 1
        same_b = (ri >> sh) == (ci >> sh)
        causal = (ri & (seqlen - 1)) >= (ci & (seqlen - 1))
    else:
        same_b = (ri // seqlen) == (ci // seqlen)
        causal = (ri % seqlen) >= (ci % seqlen)
    mask_bias = jnp.where(same_b & causal, 0.0, -1e30).astype(jnp.float32)  # (BT, BT)

    for l in range(nlayers):                                        # static unroll
        ln_l = ln_ref[l]                                            # (4, D)

        # ---- multi-head causal self-attention (pre-LN), fused QKV projection ----
        xn = _layer_norm(x, ln_l[0:1, :], ln_l[1:2, :]).astype(bf16)    # (BT, D)
        # one lane-dense N=192 matmul; attention scale is folded into the Wq/bq columns
        qkv = (jnp.dot(xn, wqkv_ref[l], preferred_element_type=jnp.float32)
               + bqkv_ref[l]).astype(bf16)                              # (BT, 3D) bf16

        heads = []
        for hh in range(nheads):                                    # static unroll over 4 heads
            qh = qkv[:, 0 * d + hh * hd: 0 * d + (hh + 1) * hd]     # (BT, hd) bf16
            kh = qkv[:, 1 * d + hh * hd: 1 * d + (hh + 1) * hd]
            vh = qkv[:, 2 * d + hh * hd: 2 * d + (hh + 1) * hd]
            s = jnp.dot(qh, kh.T, preferred_element_type=jnp.float32) + mask_bias
            s = s - jnp.max(s, axis=-1, keepdims=True)
            p = jnp.exp(s)
            p = p * pl.reciprocal(jnp.sum(p, axis=-1, keepdims=True), approx=True)
            heads.append(jnp.dot(p.astype(bf16), vh,
                                 preferred_element_type=jnp.float32))   # (BT, hd) f32

        # lane-concat of head outputs == concat, then ONE (BT,64)@(64,64) projection
        attn = jnp.concatenate(heads, axis=-1).astype(bf16)         # (BT, D)
        x = x + jnp.dot(attn, wo_ref[l],
                        preferred_element_type=jnp.float32) + bo_ref[l]

        # ---- feed-forward (pre-LN) ----
        xn2 = _layer_norm(x, ln_l[2:3, :], ln_l[3:4, :]).astype(bf16)
        hff = jnp.dot(xn2, w1_ref[l], preferred_element_type=jnp.float32) + b1_ref[l]
        hff = jnp.maximum(hff, 0.0)
        ff = jnp.dot(hff.astype(bf16), w2_ref[l],
                     preferred_element_type=jnp.float32) + b2_ref[l]
        x = x + ff

    # ---- final LayerNorm + lm_head (V padded to 128 lanes -> unmasked lane-dense stores) ----
    xf = _layer_norm(x, lnf_ref[0:1, :], lnf_ref[1:2, :]).astype(bf16)
    out_ref[...] = jnp.dot(xf, wlm_ref[...],
                           preferred_element_type=jnp.float32) + blm_ref[...]


# --------------------- one-time weight preparation (hoisted) --------------------
def prepare_params(params):
    """All layout plumbing done ONCE: bf16 casts, lm_head lane padding, scale folding."""
    bf16 = jnp.bfloat16
    D, V = NHIDDEN, VOCAB_SIZE
    scale = 1.0 / float(HEAD_DIM) ** 0.5                          # 0.25 (exact power of two)

    wqkv = params["wqkv"].astype(jnp.float32).at[:, :, :D].multiply(scale)
    bqkv = params["bqkv"].astype(jnp.float32).at[:, :, :D].multiply(scale)

    return {
        "emb": params["embedding_table"].astype(bf16),            # (V, D)
        "pos": params["position_embedding_table"].astype(jnp.float32),  # (T, D)
        "ln": params["ln_params"].astype(jnp.float32),            # (L, 4, D)
        "wqkv": wqkv.astype(bf16),                                # (L, D, 3D), Wq pre-scaled
        "bqkv": bqkv,                                             # (L, 1, 3D) f32
        "wo": params["wo"].astype(bf16),                          # (L, D, D)
        "bo": params["bo"].astype(jnp.float32),
        "w1": params["w1"].astype(bf16),
        "b1": params["b1"].astype(jnp.float32),
        "w2": params["w2"].astype(bf16),
        "b2": params["b2"].astype(jnp.float32),
        "ln_f": params["ln_f"].astype(jnp.float32),
        "w_lm": jnp.zeros((D, VPAD), jnp.float32).at[:, :V].set(params["w_lm"]).astype(bf16),
        "b_lm": jnp.zeros((1, VPAD), jnp.float32).at[:, :V].set(params["b_lm"]),
    }


# ------------------------------- JAX wrapper -----------------------------------
@jax.jit
def _forward_logits(idx, prep):
    B, T = idx.shape
    BT = B * T
    idx_flat = idx.reshape(BT, 1).astype(jnp.int32)
    pos_tiled = jnp.tile(prep["pos"][:T], (B, 1))                 # (BT, D)

    kernel = functools.partial(bigram_kernel, NLAYERS, NHEADS, B, T)

    # Single invocation (no grid): whole problem fits in VMEM (<1 MiB), so the batch is
    # folded into the row axis and everything is staged once.
    logits_pad = pl.pallas_call(
        kernel,
        out_shape=jax.ShapeDtypeStruct((BT, VPAD), jnp.float32),
    )(idx_flat, prep["emb"], pos_tiled, prep["ln"],
      prep["wqkv"], prep["bqkv"], prep["wo"], prep["bo"],
      prep["w1"], prep["b1"], prep["w2"], prep["b2"],
      prep["ln_f"], prep["w_lm"], prep["b_lm"])

    return logits_pad[:, :VOCAB_SIZE].reshape(B, T, VOCAB_SIZE)


def bigram_forward(idx, prep, targets=None):
    """Forward pass. Returns (logits, loss) like the PyTorch module."""
    logits = _forward_logits(idx, prep)
    loss = jnp.zeros((), jnp.float32)        # module returns 0 when targets is None
    if targets is not None:
        B, T, V = logits.shape
        flat_logits = logits.reshape(B * T, V)
        flat_targets = targets.reshape(B * T)
        logp = jax.nn.log_softmax(flat_logits, axis=-1)
        loss = -jnp.mean(jnp.take_along_axis(logp, flat_targets[:, None], axis=-1))
    return logits, loss


# ------------------------- pure-JAX reference (check) ---------------------------
def _reference_forward(idx, params):
    """Reference mirroring the kernel's matmul precision policy (bf16 inputs, f32 accumulate)."""
    B, T = idx.shape
    D, hd = NHIDDEN, HEAD_DIM
    bf16 = jnp.bfloat16
    scale = 1.0 / float(hd) ** 0.5

    def mm(a, b):
        return jnp.dot(a.astype(bf16), b.astype(bf16), preferred_element_type=jnp.float32)

    def ln(x, g, b):
        mu = x.mean(-1, keepdims=True)
        var = ((x - mu) ** 2).mean(-1, keepdims=True)
        return (x - mu) / jnp.sqrt(var + LN_EPS) * g + b

    emb = params["embedding_table"].astype(bf16).astype(jnp.float32)
    x = emb[idx] + params["position_embedding_table"][:T]
    causal = jnp.tril(jnp.ones((T, T), dtype=bool))

    for l in range(NLAYERS):
        g1, b1_, g2, b2_ = [params["ln_params"][l, i] for i in range(4)]
        xn = ln(x, g1, b1_)
        qkv = mm(xn, params["wqkv"][l]) + params["bqkv"][l]
        q, k, v = jnp.split(qkv, 3, axis=-1)
        q = q.reshape(B, T, NHEADS, hd).transpose(0, 2, 1, 3)
        k = k.reshape(B, T, NHEADS, hd).transpose(0, 2, 1, 3)
        v = v.reshape(B, T, NHEADS, hd).transpose(0, 2, 1, 3)
        s = jnp.einsum("bhqd,bhkd->bhqk", q.astype(bf16), k.astype(bf16),
                       preferred_element_type=jnp.float32) * scale
        s = jnp.where(causal, s, -1e30)
        p = jax.nn.softmax(s, axis=-1)
        a = jnp.einsum("bhqk,bhkd->bhqd", p.astype(bf16), v.astype(bf16),
                       preferred_element_type=jnp.float32)
        a = a.transpose(0, 2, 1, 3).reshape(B, T, D)
        x = x + mm(a, params["wo"][l]) + params["bo"][l]
        xn2 = ln(x, g2, b2_)
        h = jnp.maximum(mm(xn2, params["w1"][l]) + params["b1"][l], 0.0)
        x = x + mm(h, params["w2"][l]) + params["b2"][l]
    xf = ln(x, params["ln_f"][0], params["ln_f"][1])
    return mm(xf, params["w_lm"]) + params["b_lm"]


# ------------------------------- init & main ------------------------------------
def init_params(key):
    ks = jax.random.split(key, 12)
    s = 0.02
    D, V = NHIDDEN, VOCAB_SIZE
    params = {
        "embedding_table": jax.random.normal(ks[0], (V, D), jnp.float32) * s,
        "position_embedding_table":
            jax.random.normal(ks[1], (CONTEXT_LENGTH, D), jnp.float32) * s,
        "ln_params": jnp.tile(
            jnp.stack([jnp.ones(D), jnp.zeros(D), jnp.ones(D), jnp.zeros(D)])[None],
            (NLAYERS, 1, 1)).astype(jnp.float32),
        "wqkv": jax.random.normal(ks[2], (NLAYERS, D, 3 * D), jnp.float32) * s,
        "bqkv": jnp.zeros((NLAYERS, 1, 3 * D), jnp.float32),
        "wo": jax.random.normal(ks[3], (NLAYERS, D, D), jnp.float32) * s,
        "bo": jnp.zeros((NLAYERS, 1, D), jnp.float32),
        "w1": jax.random.normal(ks[4], (NLAYERS, D, FF_DIM), jnp.float32) * s,
        "b1": jnp.zeros((NLAYERS, 1, FF_DIM), jnp.float32),
        "w2": jax.random.normal(ks[5], (NLAYERS, FF_DIM, D), jnp.float32) * s,
        "b2": jnp.zeros((NLAYERS, 1, D), jnp.float32),
        "ln_f": jnp.stack([jnp.ones(D), jnp.zeros(D)]).astype(jnp.float32),
        "w_lm": jax.random.normal(ks[6], (D, V), jnp.float32) * s,
        "b_lm": jnp.zeros((1, V), jnp.float32),
    }
    return params


if __name__ == "__main__":
    key = jax.random.PRNGKey(0)
    pkey, ikey = jax.random.split(key)
    params = init_params(pkey)
    prep = jax.block_until_ready(prepare_params(params))   # one-time weight prep (hoisted)

    B, T = 2, CONTEXT_LENGTH
    idx = jax.random.randint(ikey, (B, T), 0, VOCAB_SIZE, dtype=jnp.int32)

    logits, loss = bigram_forward(idx, prep)
    logits = jax.block_until_ready(logits)

    ref = _reference_forward(idx, params)
    assert logits.shape == (B, T, VOCAB_SIZE)
    assert jnp.allclose(logits, ref, rtol=5e-3, atol=5e-3), (
        "mismatch vs reference, max abs diff = "
        f"{float(jnp.max(jnp.abs(logits - ref)))}")

    print("KERNEL_OK")
</pallas_src>

<mosaic_0001>
module attributes {stable_mosaic.version = 11 : i64} {
  func.func @bigram_kernel(%arg0: memref<16x1xi32, #tpu.memory_space<vmem>>, %arg1: memref<64x64xbf16, #tpu.memory_space<vmem>>, %arg2: memref<16x64xf32, #tpu.memory_space<vmem>>, %arg3: memref<2x4x64xf32, #tpu.memory_space<vmem>>, %arg4: memref<2x64x192xbf16, #tpu.memory_space<vmem>>, %arg5: memref<2x1x192xf32, #tpu.memory_space<vmem>>, %arg6: memref<2x64x64xbf16, #tpu.memory_space<vmem>>, %arg7: memref<2x1x64xf32, #tpu.memory_space<vmem>>, %arg8: memref<2x64x256xbf16, #tpu.memory_space<vmem>>, %arg9: memref<2x1x256xf32, #tpu.memory_space<vmem>>, %arg10: memref<2x256x64xbf16, #tpu.memory_space<vmem>>, %arg11: memref<2x1x64xf32, #tpu.memory_space<vmem>>, %arg12: memref<2x64xf32, #tpu.memory_space<vmem>>, %arg13: memref<64x128xbf16, #tpu.memory_space<vmem>>, %arg14: memref<1x128xf32, #tpu.memory_space<vmem>>, %arg15: memref<16x128xf32, #tpu.memory_space<vmem>>) attributes {dimension_semantics = [], scalar_prefetch = 0 : i64, scratch_operands = 0 : i64, tpu.core_type = #tpu.core_type<tc>} {
    %c0 = arith.constant 0 : index
    %c0_0 = arith.constant 0 : index
    %0 = vector.load %arg0[%c0, %c0_0] : memref<16x1xi32, #tpu.memory_space<vmem>>, vector<16x1xi32>
    %1 = tpu.iota {dimensions = array<i32: 1>} : vector<16x64xi32>
    %2 = vector.broadcast %0 : vector<16x1xi32> to vector<16x64xi32>
    %3 = arith.cmpi eq, %2, %1 : vector<16x64xi32>
    %4 = arith.extui %3 : vector<16x64xi1> to vector<16x64xi32>
    %5 = arith.sitofp %4 : vector<16x64xi32> to vector<16x64xf32>
    %6 = arith.truncf %5 : vector<16x64xf32> to vector<16x64xbf16>
    %c0_1 = arith.constant 0 : index
    %c0_2 = arith.constant 0 : index
    %7 = vector.load %arg1[%c0_1, %c0_2] : memref<64x64xbf16, #tpu.memory_space<vmem>>, vector<64x64xbf16>
    %cst = arith.constant dense<0.000000e+00> : vector<16x64xf32>
    %8 = tpu.matmul %6, %7, %cst {dimension_numbers = #tpu.dot_dimension_numbers<[1], [0], [0], [1], [0, 0, 1, 1], [], []>} : vector<16x64xbf16>, vector<64x64xbf16>, vector<16x64xf32> -> vector<16x64xf32>
    %c0_3 = arith.constant 0 : index
    %c0_4 = arith.constant 0 : index
    %9 = vector.load %arg2[%c0_3, %c0_4] : memref<16x64xf32, #tpu.memory_space<vmem>>, vector<16x64xf32>
    %10 = arith.addf %8, %9 : vector<16x64xf32>
    %11 = tpu.iota {dimensions = array<i32: 0>} : vector<16x16xi32>
    %12 = tpu.iota {dimensions = array<i32: 1>} : vector<16x16xi32>
    %c3_i32 = arith.constant 3 : i32
    %13 = vector.broadcast %c3_i32 : i32 to vector<16x16xi32>
    %14 = arith.shrsi %11, %13 : vector<16x16xi32>
    %c3_i32_5 = arith.constant 3 : i32
    %15 = vector.broadcast %c3_i32_5 : i32 to vector<16x16xi32>
    %16 = arith.shrsi %12, %15 : vector<16x16xi32>
    %17 = arith.cmpi eq, %14, %16 : vector<16x16xi32>
    %c7_i32 = arith.constant 7 : i32
    %18 = vector.broadcast %c7_i32 : i32 to vector<16x16xi32>
    %19 = arith.andi %11, %18 : vector<16x16xi32>
    %c7_i32_6 = arith.constant 7 : i32
    %20 = vector.broadcast %c7_i32_6 : i32 to vector<16x16xi32>
    %21 = arith.andi %12, %20 : vector<16x16xi32>
    %22 = arith.cmpi sge, %19, %21 : vector<16x16xi32>
    %23 = arith.andi %17, %22 : vector<16x16xi1>
    %cst_7 = arith.constant 0.000000e+00 : f32
    %cst_8 = arith.constant -1.000000e+30 : f32
    %24 = vector.broadcast %cst_7 : f32 to vector<16x16xf32>
    %25 = vector.broadcast %cst_8 : f32 to vector<16x16xf32>
    %26 = arith.select %23, %24, %25 : vector<16x16xi1>, vector<16x16xf32>
    %c0_9 = arith.constant 0 : index
    %c0_10 = arith.constant 0 : index
    %c0_11 = arith.constant 0 : index
    %27 = vector.load %arg3[%c0_9, %c0_10, %c0_11] : memref<2x4x64xf32, #tpu.memory_space<vmem>>, vector<1x4x64xf32>
    %28 = vector.shape_cast %27 : vector<1x4x64xf32> to vector<4x64xf32>
    %29 = vector.extract_strided_slice %28 {offsets = [0, 0], sizes = [1, 64], strides = [1, 1]} : vector<4x64xf32> to vector<1x64xf32>
    %30 = vector.extract_strided_slice %28 {offsets = [1, 0], sizes = [1, 64], strides = [1, 1]} : vector<4x64xf32> to vector<1x64xf32>
    %cst_12 = arith.constant dense<0.000000e+00> : vector<16xf32>
    %31 = vector.multi_reduction <add>, %10, %cst_12 [1] : vector<16x64xf32> to vector<16xf32>
    %32 = vector.shape_cast %31 : vector<16xf32> to vector<16x1xf32>
    %cst_13 = arith.constant 6.400000e+01 : f32
    %33 = vector.broadcast %cst_13 : f32 to vector<16x1xf32>
    %34 = arith.divf %32, %33 : vector<16x1xf32>
    %35 = vector.broadcast %34 : vector<16x1xf32> to vector<16x64xf32>
    %36 = arith.subf %10, %35 : vector<16x64xf32>
    %37 = arith.mulf %36, %36 : vector<16x64xf32>
    %cst_14 = arith.constant dense<0.000000e+00> : vector<16xf32>
    %38 = vector.multi_reduction <add>, %37, %cst_14 [1] : vector<16x64xf32> to vector<16xf32>
    %39 = vector.shape_cast %38 : vector<16xf32> to vector<16x1xf32>
    %cst_15 = arith.constant 6.400000e+01 : f32
    %40 = vector.broadcast %cst_15 : f32 to vector<16x1xf32>
    %41 = arith.divf %39, %40 : vector<16x1xf32>
    %42 = vector.broadcast %34 : vector<16x1xf32> to vector<16x64xf32>
    %43 = arith.subf %10, %42 : vector<16x64xf32>
    %cst_16 = arith.constant 9.99999974E-6 : f32
    %44 = vector.broadcast %cst_16 : f32 to vector<16x1xf32>
    %45 = arith.addf %41, %44 : vector<16x1xf32>
    %46 = math.rsqrt %45 : vector<16x1xf32>
    %47 = vector.broadcast %46 : vector<16x1xf32> to vector<16x64xf32>
    %48 = arith.mulf %43, %47 : vector<16x64xf32>
    %49 = vector.broadcast %29 : vector<1x64xf32> to vector<16x64xf32>
    %50 = arith.mulf %48, %49 : vector<16x64xf32>
    %51 = vector.broadcast %30 : vector<1x64xf32> to vector<16x64xf32>
    %52 = arith.addf %50, %51 : vector<16x64xf32>
    %53 = arith.truncf %52 : vector<16x64xf32> to vector<16x64xbf16>
    %c0_17 = arith.constant 0 : index
    %c0_18 = arith.constant 0 : index
    %c0_19 = arith.constant 0 : index
    %54 = vector.load %arg4[%c0_17, %c0_18, %c0_19] : memref<2x64x192xbf16, #tpu.memory_space<vmem>>, vector<1x64x192xbf16>
    %55 = vector.shape_cast %54 : vector<1x64x192xbf16> to vector<64x192xbf16>
    %cst_20 = arith.constant dense<0.000000e+00> : vector<16x192xf32>
    %56 = tpu.matmul %53, %55, %cst_20 {dimension_numbers = #tpu.dot_dimension_numbers<[1], [0], [0], [1], [0, 0, 1, 1], [], []>} : vector<16x64xbf16>, vector<64x192xbf16>, vector<16x192xf32> -> vector<16x192xf32>
    %c0_21 = arith.constant 0 : index
    %c0_22 = arith.constant 0 : index
    %c0_23 = arith.constant 0 : index
    %57 = vector.load %arg5[%c0_21, %c0_22, %c0_23] : memref<2x1x192xf32, #tpu.memory_space<vmem>>, vector<1x1x192xf32>
    %58 = vector.shape_cast %57 : vector<1x1x192xf32> to vector<1x192xf32>
    %59 = vector.broadcast %58 : vector<1x192xf32> to vector<16x192xf32>
    %60 = arith.addf %56, %59 : vector<16x192xf32>
    %61 = arith.truncf %60 : vector<16x192xf32> to vector<16x192xbf16>
    %62 = vector.extract_strided_slice %61 {offsets = [0, 0], sizes = [16, 16], strides = [1, 1]} : vector<16x192xbf16> to vector<16x16xbf16>
    %63 = vector.extract_strided_slice %61 {offsets = [0, 64], sizes = [16, 16], strides = [1, 1]} : vector<16x192xbf16> to vector<16x16xbf16>
    %64 = vector.extract_strided_slice %61 {offsets = [0, 128], sizes = [16, 16], strides = [1, 1]} : vector<16x192xbf16> to vector<16x16xbf16>
    %65 = tpu.transpose %63, [1, 0] : vector<16x16xbf16> -> vector<16x16xbf16>
    %cst_24 = arith.constant dense<0.000000e+00> : vector<16x16xf32>
    %66 = tpu.matmul %62, %65, %cst_24 {dimension_numbers = #tpu.dot_dimension_numbers<[1], [0], [0], [1], [0, 0, 1, 1], [], []>} : vector<16x16xbf16>, vector<16x16xbf16>, vector<16x16xf32> -> vector<16x16xf32>
    %67 = arith.addf %66, %26 : vector<16x16xf32>
    %cst_25 = arith.constant dense<0xFF800000> : vector<16xf32>
    %68 = vector.multi_reduction <maximumf>, %67, %cst_25 [1] : vector<16x16xf32> to vector<16xf32>
    %69 = vector.shape_cast %68 : vector<16xf32> to vector<16x1xf32>
    %70 = vector.broadcast %69 : vector<16x1xf32> to vector<16x16xf32>
    %71 = arith.subf %67, %70 : vector<16x16xf32>
    %72 = math.exp %71 : vector<16x16xf32>
    %cst_26 = arith.constant dense<0.000000e+00> : vector<16xf32>
    %73 = vector.multi_reduction <add>, %72, %cst_26 [1] : vector<16x16xf32> to vector<16xf32>
    %74 = vector.shape_cast %73 : vector<16xf32> to vector<16x1xf32>
    %75 = tpu.reciprocal %74 {approx = true} : vector<16x1xf32> -> vector<16x1xf32>
    %76 = vector.broadcast %75 : vector<16x1xf32> to vector<16x16xf32>
    %77 = arith.mulf %72, %76 : vector<16x16xf32>
    %78 = arith.truncf %77 : vector<16x16xf32> to vector<16x16xbf16>
    %cst_27 = arith.constant dense<0.000000e+00> : vector<16x16xf32>
    %79 = tpu.matmul %78, %64, %cst_27 {dimension_numbers = #tpu.dot_dimension_numbers<[1], [0], [0], [1], [0, 0, 1, 1], [], []>} : vector<16x16xbf16>, vector<16x16xbf16>, vector<16x16xf32> -> vector<16x16xf32>
    %80 = vector.extract_strided_slice %61 {offsets = [0, 16], sizes = [16, 16], strides = [1, 1]} : vector<16x192xbf16> to vector<16x16xbf16>
    %81 = vector.extract_strided_slice %61 {offsets = [0, 80], sizes = [16, 16], strides = [1, 1]} : vector<16x192xbf16> to vector<16x16xbf16>
    %82 = vector.extract_strided_slice %61 {offsets = [0, 144], sizes = [16, 16], strides = [1, 1]} : vector<16x192xbf16> to vector<16x16xbf16>
    %83 = tpu.transpose %81, [1, 0] : vector<16x16xbf16> -> vector<16x16xbf16>
    %cst_28 = arith.constant dense<0.000000e+00> : vector<16x16xf32>
    %84 = tpu.matmul %80, %83, %cst_28 {dimension_numbers = #tpu.dot_dimension_numbers<[1], [0], [0], [1], [0, 0, 1, 1], [], []>} : vector<16x16xbf16>, vector<16x16xbf16>, vector<16x16xf32> -> vector<16x16xf32>
    %85 = arith.addf %84, %26 : vector<16x16xf32>
    %cst_29 = arith.constant dense<0xFF800000> : vector<16xf32>
    %86 = vector.multi_reduction <maximumf>, %85, %cst_29 [1] : vector<16x16xf32> to vector<16xf32>
    %87 = vector.shape_cast %86 : vector<16xf32> to vector<16x1xf32>
    %88 = vector.broadcast %87 : vector<16x1xf32> to vector<16x16xf32>
    %89 = arith.subf %85, %88 : vector<16x16xf32>
    %90 = math.exp %89 : vector<16x16xf32>
    %cst_30 = arith.constant dense<0.000000e+00> : vector<16xf32>
    %91 = vector.multi_reduction <add>, %90, %cst_30 [1] : vector<16x16xf32> to vector<16xf32>
    %92 = vector.shape_cast %91 : vector<16xf32> to vector<16x1xf32>
    %93 = tpu.reciprocal %92 {approx = true} : vector<16x1xf32> -> vector<16x1xf32>
    %94 = vector.broadcast %93 : vector<16x1xf32> to vector<16x16xf32>
    %95 = arith.mulf %90, %94 : vector<16x16xf32>
    %96 = arith.truncf %95 : vector<16x16xf32> to vector<16x16xbf16>
    %cst_31 = arith.constant dense<0.000000e+00> : vector<16x16xf32>
    %97 = tpu.matmul %96, %82, %cst_31 {dimension_numbers = #tpu.dot_dimension_numbers<[1], [0], [0], [1], [0, 0, 1, 1], [], []>} : vector<16x16xbf16>, vector<16x16xbf16>, vector<16x16xf32> -> vector<16x16xf32>
    %98 = vector.extract_strided_slice %61 {offsets = [0, 32], sizes = [16, 16], strides = [1, 1]} : vector<16x192xbf16> to vector<16x16xbf16>
    %99 = vector.extract_strided_slice %61 {offsets = [0, 96], sizes = [16, 16], strides = [1, 1]} : vector<16x192xbf16> to vector<16x16xbf16>
    %100 = vector.extract_strided_slice %61 {offsets = [0, 160], sizes = [16, 16], strides = [1, 1]} : vector<16x192xbf16> to vector<16x16xbf16>
    %101 = tpu.transpose %99, [1, 0] : vector<16x16xbf16> -> vector<16x16xbf16>
    %cst_32 = arith.constant dense<0.000000e+00> : vector<16x16xf32>
    %102 = tpu.matmul %98, %101, %cst_32 {dimension_numbers = #tpu.dot_dimension_numbers<[1], [0], [0], [1], [0, 0, 1, 1], [], []>} : vector<16x16xbf16>, vector<16x16xbf16>, vector<16x16xf32> -> vector<16x16xf32>
    %103 = arith.addf %102, %26 : vector<16x16xf32>
    %cst_33 = arith.constant dense<0xFF800000> : vector<16xf32>
    %104 = vector.multi_reduction <maximumf>, %103, %cst_33 [1] : vector<16x16xf32> to vector<16xf32>
    %105 = vector.shape_cast %104 : vector<16xf32> to vector<16x1xf32>
    %106 = vector.broadcast %105 : vector<16x1xf32> to vector<16x16xf32>
    %107 = arith.subf %103, %106 : vector<16x16xf32>
    %108 = math.exp %107 : vector<16x16xf32>
    %cst_34 = arith.constant dense<0.000000e+00> : vector<16xf32>
    %109 = vector.multi_reduction <add>, %108, %cst_34 [1] : vector<16x16xf32> to vector<16xf32>
    %110 = vector.shape_cast %109 : vector<16xf32> to vector<16x1xf32>
    %111 = tpu.reciprocal %110 {approx = true} : vector<16x1xf32> -> vector<16x1xf32>
    %112 = vector.broadcast %111 : vector<16x1xf32> to vector<16x16xf32>
    %113 = arith.mulf %108, %112 : vector<16x16xf32>
    %114 = arith.truncf %113 : vector<16x16xf32> to vector<16x16xbf16>
    %cst_35 = arith.constant dense<0.000000e+00> : vector<16x16xf32>
    %115 = tpu.matmul %114, %100, %cst_35 {dimension_numbers = #tpu.dot_dimension_numbers<[1], [0], [0], [1], [0, 0, 1, 1], [], []>} : vector<16x16xbf16>, vector<16x16xbf16>, vector<16x16xf32> -> vector<16x16xf32>
    %116 = vector.extract_strided_slice %61 {offsets = [0, 48], sizes = [16, 16], strides = [1, 1]} : vector<16x192xbf16> to vector<16x16xbf16>
    %117 = vector.extract_strided_slice %61 {offsets = [0, 112], sizes = [16, 16], strides = [1, 1]} : vector<16x192xbf16> to vector<16x16xbf16>
    %118 = vector.extract_strided_slice %61 {offsets = [0, 176], sizes = [16, 16], strides = [1, 1]} : vector<16x192xbf16> to vector<16x16xbf16>
    %119 = tpu.transpose %117, [1, 0] : vector<16x16xbf16> -> vector<16x16xbf16>
    %cst_36 = arith.constant dense<0.000000e+00> : vector<16x16xf32>
    %120 = tpu.matmul %116, %119, %cst_36 {dimension_numbers = #tpu.dot_dimension_numbers<[1], [0], [0], [1], [0, 0, 1, 1], [], []>} : vector<16x16xbf16>, vector<16x16xbf16>, vector<16x16xf32> -> vector<16x16xf32>
    %121 = arith.addf %120, %26 : vector<16x16xf32>
    %cst_37 = arith.constant dense<0xFF800000> : vector<16xf32>
    %122 = vector.multi_reduction <maximumf>, %121, %cst_37 [1] : vector<16x16xf32> to vector<16xf32>
    %123 = vector.shape_cast %122 : vector<16xf32> to vector<16x1xf32>
    %124 = vector.broadcast %123 : vector<16x1xf32> to vector<16x16xf32>
    %125 = arith.subf %121, %124 : vector<16x16xf32>
    %126 = math.exp %125 : vector<16x16xf32>
    %cst_38 = arith.constant dense<0.000000e+00> : vector<16xf32>
    %127 = vector.multi_reduction <add>, %126, %cst_38 [1] : vector<16x16xf32> to vector<16xf32>
    %128 = vector.shape_cast %127 : vector<16xf32> to vector<16x1xf32>
    %129 = tpu.reciprocal %128 {approx = true} : vector<16x1xf32> -> vector<16x1xf32>
    %130 = vector.broadcast %129 : vector<16x1xf32> to vector<16x16xf32>
    %131 = arith.mulf %126, %130 : vector<16x16xf32>
    %132 = arith.truncf %131 : vector<16x16xf32> to vector<16x16xbf16>
    %cst_39 = arith.constant dense<0.000000e+00> : vector<16x16xf32>
    %133 = tpu.matmul %132, %118, %cst_39 {dimension_numbers = #tpu.dot_dimension_numbers<[1], [0], [0], [1], [0, 0, 1, 1], [], []>} : vector<16x16xbf16>, vector<16x16xbf16>, vector<16x16xf32> -> vector<16x16xf32>
    %134 = tpu.concatenate %79, %97, %115, %133 in 1 : vector<16x16xf32>, vector<16x16xf32>, vector<16x16xf32>, vector<16x16xf32> -> vector<16x64xf32>
    %135 = arith.truncf %134 : vector<16x64xf32> to vector<16x64xbf16>
    %c0_40 = arith.constant 0 : index
    %c0_41 = arith.constant 0 : index
    %c0_42 = arith.constant 0 : index
    %136 = vector.load %arg6[%c0_40, %c0_41, %c0_42] : memref<2x64x64xbf16, #tpu.memory_space<vmem>>, vector<1x64x64xbf16>
    %137 = vector.shape_cast %136 : vector<1x64x64xbf16> to vector<64x64xbf16>
    %cst_43 = arith.constant dense<0.000000e+00> : vector<16x64xf32>
    %138 = tpu.matmul %135, %137, %cst_43 {dimension_numbers = #tpu.dot_dimension_numbers<[1], [0], [0], [1], [0, 0, 1, 1], [], []>} : vector<16x64xbf16>, vector<64x64xbf16>, vector<16x64xf32> -> vector<16x64xf32>
    %139 = arith.addf %10, %138 : vector<16x64xf32>
    %c0_44 = arith.constant 0 : index
    %c0_45 = arith.constant 0 : index
    %c0_46 = arith.constant 0 : index
    %140 = vector.load %arg7[%c0_44, %c0_45, %c0_46] : memref<2x1x64xf32, #tpu.memory_space<vmem>>, vector<1x1x64xf32>
    %141 = vector.shape_cast %140 : vector<1x1x64xf32> to vector<1x64xf32>
    %142 = vector.broadcast %141 : vector<1x64xf32> to vector<16x64xf32>
    %143 = arith.addf %139, %142 : vector<16x64xf32>
    %144 = vector.extract_strided_slice %28 {offsets = [2, 0], sizes = [1, 64], strides = [1, 1]} : vector<4x64xf32> to vector<1x64xf32>
    %145 = vector.extract_strided_slice %28 {offsets = [3, 0], sizes = [1, 64], strides = [1, 1]} : vector<4x64xf32> to vector<1x64xf32>
    %cst_47 = arith.constant dense<0.000000e+00> : vector<16xf32>
    %146 = vector.multi_reduction <add>, %143, %cst_47 [1] : vector<16x64xf32> to vector<16xf32>
    %147 = vector.shape_cast %146 : vector<16xf32> to vector<16x1xf32>
    %cst_48 = arith.constant 6.400000e+01 : f32
    %148 = vector.broadcast %cst_48 : f32 to vector<16x1xf32>
    %149 = arith.divf %147, %148 : vector<16x1xf32>
    %150 = vector.broadcast %149 : vector<16x1xf32> to vector<16x64xf32>
    %151 = arith.subf %143, %150 : vector<16x64xf32>
    %152 = arith.mulf %151, %151 : vector<16x64xf32>
    %cst_49 = arith.constant dense<0.000000e+00> : vector<16xf32>
    %153 = vector.multi_reduction <add>, %152, %cst_49 [1] : vector<16x64xf32> to vector<16xf32>
    %154 = vector.shape_cast %153 : vector<16xf32> to vector<16x1xf32>
    %cst_50 = arith.constant 6.400000e+01 : f32
    %155 = vector.broadcast %cst_50 : f32 to vector<16x1xf32>
    %156 = arith.divf %154, %155 : vector<16x1xf32>
    %157 = vector.broadcast %149 : vector<16x1xf32> to vector<16x64xf32>
    %158 = arith.subf %143, %157 : vector<16x64xf32>
    %cst_51 = arith.constant 9.99999974E-6 : f32
    %159 = vector.broadcast %cst_51 : f32 to vector<16x1xf32>
    %160 = arith.addf %156, %159 : vector<16x1xf32>
    %161 = math.rsqrt %160 : vector<16x1xf32>
    %162 = vector.broadcast %161 : vector<16x1xf32> to vector<16x64xf32>
    %163 = arith.mulf %158, %162 : vector<16x64xf32>
    %164 = vector.broadcast %144 : vector<1x64xf32> to vector<16x64xf32>
    %165 = arith.mulf %163, %164 : vector<16x64xf32>
    %166 = vector.broadcast %145 : vector<1x64xf32> to vector<16x64xf32>
    %167 = arith.addf %165, %166 : vector<16x64xf32>
    %168 = arith.truncf %167 : vector<16x64xf32> to vector<16x64xbf16>
    %c0_52 = arith.constant 0 : index
    %c0_53 = arith.constant 0 : index
    %c0_54 = arith.constant 0 : index
    %169 = vector.load %arg8[%c0_52, %c0_53, %c0_54] : memref<2x64x256xbf16, #tpu.memory_space<vmem>>, vector<1x64x256xbf16>
    %170 = vector.shape_cast %169 : vector<1x64x256xbf16> to vector<64x256xbf16>
    %cst_55 = arith.constant dense<0.000000e+00> : vector<16x256xf32>
    %171 = tpu.matmul %168, %170, %cst_55 {dimension_numbers = #tpu.dot_dimension_numbers<[1], [0], [0], [1], [0, 0, 1, 1], [], []>} : vector<16x64xbf16>, vector<64x256xbf16>, vector<16x256xf32> -> vector<16x256xf32>
    %c0_56 = arith.constant 0 : index
    %c0_57 = arith.constant 0 : index
    %c0_58 = arith.constant 0 : index
    %172 = vector.load %arg9[%c0_56, %c0_57, %c0_58] : memref<2x1x256xf32, #tpu.memory_space<vmem>>, vector<1x1x256xf32>
    %173 = vector.shape_cast %172 : vector<1x1x256xf32> to vector<1x256xf32>
    %174 = vector.broadcast %173 : vector<1x256xf32> to vector<16x256xf32>
    %175 = arith.addf %171, %174 : vector<16x256xf32>
    %cst_59 = arith.constant 0.000000e+00 : f32
    %176 = vector.broadcast %cst_59 : f32 to vector<16x256xf32>
    %177 = arith.maximumf %175, %176 : vector<16x256xf32>
    %178 = arith.truncf %177 : vector<16x256xf32> to vector<16x256xbf16>
    %c0_60 = arith.constant 0 : index
    %c0_61 = arith.constant 0 : index
    %c0_62 = arith.constant 0 : index
    %179 = vector.load %arg10[%c0_60, %c0_61, %c0_62] : memref<2x256x64xbf16, #tpu.memory_space<vmem>>, vector<1x256x64xbf16>
    %180 = vector.shape_cast %179 : vector<1x256x64xbf16> to vector<256x64xbf16>
    %cst_63 = arith.constant dense<0.000000e+00> : vector<16x64xf32>
    %181 = tpu.matmul %178, %180, %cst_63 {dimension_numbers = #tpu.dot_dimension_numbers<[1], [0], [0], [1], [0, 0, 1, 1], [], []>} : vector<16x256xbf16>, vector<256x64xbf16>, vector<16x64xf32> -> vector<16x64xf32>
    %c0_64 = arith.constant 0 : index
    %c0_65 = arith.constant 0 : index
    %c0_66 = arith.constant 0 : index
    %182 = vector.load %arg11[%c0_64, %c0_65, %c0_66] : memref<2x1x64xf32, #tpu.memory_space<vmem>>, vector<1x1x64xf32>
    %183 = vector.shape_cast %182 : vector<1x1x64xf32> to vector<1x64xf32>
    %184 = vector.broadcast %183 : vector<1x64xf32> to vector<16x64xf32>
    %185 = arith.addf %181, %184 : vector<16x64xf32>
    %186 = arith.addf %143, %185 : vector<16x64xf32>
    %c1 = arith.constant 1 : index
    %c0_67 = arith.constant 0 : index
    %c0_68 = arith.constant 0 : index
    %187 = vector.load %arg3[%c1, %c0_67, %c0_68] : memref<2x4x64xf32, #tpu.memory_space<vmem>>, vector<1x4x64xf32>
    %188 = vector.shape_cast %187 : vector<1x4x64xf32> to vector<4x64xf32>
    %189 = vector.extract_strided_slice %188 {offsets = [0, 0], sizes = [1, 64], strides = [1, 1]} : vector<4x64xf32> to vector<1x64xf32>
    %190 = vector.extract_strided_slice %188 {offsets = [1, 0], sizes = [1, 64], strides = [1, 1]} : vector<4x64xf32> to vector<1x64xf32>
    %cst_69 = arith.constant dense<0.000000e+00> : vector<16xf32>
    %191 = vector.multi_reduction <add>, %186, %cst_69 [1] : vector<16x64xf32> to vector<16xf32>
    %192 = vector.shape_cast %191 : vector<16xf32> to vector<16x1xf32>
    %cst_70 = arith.constant 6.400000e+01 : f32
    %193 = vector.broadcast %cst_70 : f32 to vector<16x1xf32>
    %194 = arith.divf %192, %193 : vector<16x1xf32>
    %195 = vector.broadcast %194 : vector<16x1xf32> to vector<16x64xf32>
    %196 = arith.subf %186, %195 : vector<16x64xf32>
    %197 = arith.mulf %196, %196 : vector<16x64xf32>
    %cst_71 = arith.constant dense<0.000000e+00> : vector<16xf32>
    %198 = vector.multi_reduction <add>, %197, %cst_71 [1] : vector<16x64xf32> to vector<16xf32>
    %199 = vector.shape_cast %198 : vector<16xf32> to vector<16x1xf32>
    %cst_72 = arith.constant 6.400000e+01 : f32
    %200 = vector.broadcast %cst_72 : f32 to vector<16x1xf32>
    %201 = arith.divf %199, %200 : vector<16x1xf32>
    %202 = vector.broadcast %194 : vector<16x1xf32> to vector<16x64xf32>
    %203 = arith.subf %186, %202 : vector<16x64xf32>
    %cst_73 = arith.constant 9.99999974E-6 : f32
    %204 = vector.broadcast %cst_73 : f32 to vector<16x1xf32>
    %205 = arith.addf %201, %204 : vector<16x1xf32>
    %206 = math.rsqrt %205 : vector<16x1xf32>
    %207 = vector.broadcast %206 : vector<16x1xf32> to vector<16x64xf32>
    %208 = arith.mulf %203, %207 : vector<16x64xf32>
    %209 = vector.broadcast %189 : vector<1x64xf32> to vector<16x64xf32>
    %210 = arith.mulf %208, %209 : vector<16x64xf32>
    %211 = vector.broadcast %190 : vector<1x64xf32> to vector<16x64xf32>
    %212 = arith.addf %210, %211 : vector<16x64xf32>
    %213 = arith.truncf %212 : vector<16x64xf32> to vector<16x64xbf16>
    %c1_74 = arith.constant 1 : index
    %c0_75 = arith.constant 0 : index
    %c0_76 = arith.constant 0 : index
    %214 = vector.load %arg4[%c1_74, %c0_75, %c0_76] : memref<2x64x192xbf16, #tpu.memory_space<vmem>>, vector<1x64x192xbf16>
    %215 = vector.shape_cast %214 : vector<1x64x192xbf16> to vector<64x192xbf16>
    %cst_77 = arith.constant dense<0.000000e+00> : vector<16x192xf32>
    %216 = tpu.matmul %213, %215, %cst_77 {dimension_numbers = #tpu.dot_dimension_numbers<[1], [0], [0], [1], [0, 0, 1, 1], [], []>} : vector<16x64xbf16>, vector<64x192xbf16>, vector<16x192xf32> -> vector<16x192xf32>
    %c1_78 = arith.constant 1 : index
    %c0_79 = arith.constant 0 : index
    %c0_80 = arith.constant 0 : index
    %217 = vector.load %arg5[%c1_78, %c0_79, %c0_80] : memref<2x1x192xf32, #tpu.memory_space<vmem>>, vector<1x1x192xf32>
    %218 = vector.shape_cast %217 : vector<1x1x192xf32> to vector<1x192xf32>
    %219 = vector.broadcast %218 : vector<1x192xf32> to vector<16x192xf32>
    %220 = arith.addf %216, %219 : vector<16x192xf32>
    %221 = arith.truncf %220 : vector<16x192xf32> to vector<16x192xbf16>
    %222 = vector.extract_strided_slice %221 {offsets = [0, 0], sizes = [16, 16], strides = [1, 1]} : vector<16x192xbf16> to vector<16x16xbf16>
    %223 = vector.extract_strided_slice %221 {offsets = [0, 64], sizes = [16, 16], strides = [1, 1]} : vector<16x192xbf16> to vector<16x16xbf16>
    %224 = vector.extract_strided_slice %221 {offsets = [0, 128], sizes = [16, 16], strides = [1, 1]} : vector<16x192xbf16> to vector<16x16xbf16>
    %225 = tpu.transpose %223, [1, 0] : vector<16x16xbf16> -> vector<16x16xbf16>
    %cst_81 = arith.constant dense<0.000000e+00> : vector<16x16xf32>
    %226 = tpu.matmul %222, %225, %cst_81 {dimension_numbers = #tpu.dot_dimension_numbers<[1], [0], [0], [1], [0, 0, 1, 1], [], []>} : vector<16x16xbf16>, vector<16x16xbf16>, vector<16x16xf32> -> vector<16x16xf32>
    %227 = arith.addf %226, %26 : vector<16x16xf32>
    %cst_82 = arith.constant dense<0xFF800000> : vector<16xf32>
    %228 = vector.multi_reduction <maximumf>, %227, %cst_82 [1] : vector<16x16xf32> to vector<16xf32>
    %229 = vector.shape_cast %228 : vector<16xf32> to vector<16x1xf32>
    %230 = vector.broadcast %229 : vector<16x1xf32> to vector<16x16xf32>
    %231 = arith.subf %227, %230 : vector<16x16xf32>
    %232 = math.exp %231 : vector<16x16xf32>
    %cst_83 = arith.constant dense<0.000000e+00> : vector<16xf32>
    %233 = vector.multi_reduction <add>, %232, %cst_83 [1] : vector<16x16xf32> to vector<16xf32>
    %234 = vector.shape_cast %233 : vector<16xf32> to vector<16x1xf32>
    %235 = tpu.reciprocal %234 {approx = true} : vector<16x1xf32> -> vector<16x1xf32>
    %236 = vector.broadcast %235 : vector<16x1xf32> to vector<16x16xf32>
    %237 = arith.mulf %232, %236 : vector<16x16xf32>
    %238 = arith.truncf %237 : vector<16x16xf32> to vector<16x16xbf16>
    %cst_84 = arith.constant dense<0.000000e+00> : vector<16x16xf32>
    %239 = tpu.matmul %238, %224, %cst_84 {dimension_numbers = #tpu.dot_dimension_numbers<[1], [0], [0], [1], [0, 0, 1, 1], [], []>} : vector<16x16xbf16>, vector<16x16xbf16>, vector<16x16xf32> -> vector<16x16xf32>
    %240 = vector.extract_strided_slice %221 {offsets = [0, 16], sizes = [16, 16], strides = [1, 1]} : vector<16x192xbf16> to vector<16x16xbf16>
    %241 = vector.extract_strided_slice %221 {offsets = [0, 80], sizes = [16, 16], strides = [1, 1]} : vector<16x192xbf16> to vector<16x16xbf16>
    %242 = vector.extract_strided_slice %221 {offsets = [0, 144], sizes = [16, 16], strides = [1, 1]} : vector<16x192xbf16> to vector<16x16xbf16>
    %243 = tpu.transpose %241, [1, 0] : vector<16x16xbf16> -> vector<16x16xbf16>
    %cst_85 = arith.constant dense<0.000000e+00> : vector<16x16xf32>
    %244 = tpu.matmul %240, %243, %cst_85 {dimension_numbers = #tpu.dot_dimension_numbers<[1], [0], [0], [1], [0, 0, 1, 1], [], []>} : vector<16x16xbf16>, vector<16x16xbf16>, vector<16x16xf32> -> vector<16x16xf32>
    %245 = arith.addf %244, %26 : vector<16x16xf32>
    %cst_86 = arith.constant dense<0xFF800000> : vector<16xf32>
    %246 = vector.multi_reduction <maximumf>, %245, %cst_86 [1] : vector<16x16xf32> to vector<16xf32>
    %247 = vector.shape_cast %246 : vector<16xf32> to vector<16x1xf32>
    %248 = vector.broadcast %247 : vector<16x1xf32> to vector<16x16xf32>
    %249 = arith.subf %245, %248 : vector<16x16xf32>
    %250 = math.exp %249 : vector<16x16xf32>
    %cst_87 = arith.constant dense<0.000000e+00> : vector<16xf32>
    %251 = vector.multi_reduction <add>, %250, %cst_87 [1] : vector<16x16xf32> to vector<16xf32>
    %252 = vector.shape_cast %251 : vector<16xf32> to vector<16x1xf32>
    %253 = tpu.reciprocal %252 {approx = true} : vector<16x1xf32> -> vector<16x1xf32>
    %254 = vector.broadcast %253 : vector<16x1xf32> to vector<16x16xf32>
    %255 = arith.mulf %250, %254 : vector<16x16xf32>
    %256 = arith.truncf %255 : vector<16x16xf32> to vector<16x16xbf16>
    %cst_88 = arith.constant dense<0.000000e+00> : vector<16x16xf32>
    %257 = tpu.matmul %256, %242, %cst_88 {dimension_numbers = #tpu.dot_dimension_numbers<[1], [0], [0], [1], [0, 0, 1, 1], [], []>} : vector<16x16xbf16>, vector<16x16xbf16>, vector<16x16xf32> -> vector<16x16xf32>
    %258 = vector.extract_strided_slice %221 {offsets = [0, 32], sizes = [16, 16], strides = [1, 1]} : vector<16x192xbf16> to vector<16x16xbf16>
    %259 = vector.extract_strided_slice %221 {offsets = [0, 96], sizes = [16, 16], strides = [1, 1]} : vector<16x192xbf16> to vector<16x16xbf16>
    %260 = vector.extract_strided_slice %221 {offsets = [0, 160], sizes = [16, 16], strides = [1, 1]} : vector<16x192xbf16> to vector<16x16xbf16>
    %261 = tpu.transpose %259, [1, 0] : vector<16x16xbf16> -> vector<16x16xbf16>
    %cst_89 = arith.constant dense<0.000000e+00> : vector<16x16xf32>
    %262 = tpu.matmul %258, %261, %cst_89 {dimension_numbers = #tpu.dot_dimension_numbers<[1], [0], [0], [1], [0, 0, 1, 1], [], []>} : vector<16x16xbf16>, vector<16x16xbf16>, vector<16x16xf32> -> vector<16x16xf32>
    %263 = arith.addf %262, %26 : vector<16x16xf32>
    %cst_90 = arith.constant dense<0xFF800000> : vector<16xf32>
    %264 = vector.multi_reduction <maximumf>, %263, %cst_90 [1] : vector<16x16xf32> to vector<16xf32>
    %265 = vector.shape_cast %264 : vector<16xf32> to vector<16x1xf32>
    %266 = vector.broadcast %265 : vector<16x1xf32> to vector<16x16xf32>
    %267 = arith.subf %263, %266 : vector<16x16xf32>
    %268 = math.exp %267 : vector<16x16xf32>
    %cst_91 = arith.constant dense<0.000000e+00> : vector<16xf32>
    %269 = vector.multi_reduction <add>, %268, %cst_91 [1] : vector<16x16xf32> to vector<16xf32>
    %270 = vector.shape_cast %269 : vector<16xf32> to vector<16x1xf32>
    %271 = tpu.reciprocal %270 {approx = true} : vector<16x1xf32> -> vector<16x1xf32>
    %272 = vector.broadcast %271 : vector<16x1xf32> to vector<16x16xf32>
    %273 = arith.mulf %268, %272 : vector<16x16xf32>
    %274 = arith.truncf %273 : vector<16x16xf32> to vector<16x16xbf16>
    %cst_92 = arith.constant dense<0.000000e+00> : vector<16x16xf32>
    %275 = tpu.matmul %274, %260, %cst_92 {dimension_numbers = #tpu.dot_dimension_numbers<[1], [0], [0], [1], [0, 0, 1, 1], [], []>} : vector<16x16xbf16>, vector<16x16xbf16>, vector<16x16xf32> -> vector<16x16xf32>
    %276 = vector.extract_strided_slice %221 {offsets = [0, 48], sizes = [16, 16], strides = [1, 1]} : vector<16x192xbf16> to vector<16x16xbf16>
    %277 = vector.extract_strided_slice %221 {offsets = [0, 112], sizes = [16, 16], strides = [1, 1]} : vector<16x192xbf16> to vector<16x16xbf16>
    %278 = vector.extract_strided_slice %221 {offsets = [0, 176], sizes = [16, 16], strides = [1, 1]} : vector<16x192xbf16> to vector<16x16xbf16>
    %279 = tpu.transpose %277, [1, 0] : vector<16x16xbf16> -> vector<16x16xbf16>
    %cst_93 = arith.constant dense<0.000000e+00> : vector<16x16xf32>
    %280 = tpu.matmul %276, %279, %cst_93 {dimension_numbers = #tpu.dot_dimension_numbers<[1], [0], [0], [1], [0, 0, 1, 1], [], []>} : vector<16x16xbf16>, vector<16x16xbf16>, vector<16x16xf32> -> vector<16x16xf32>
    %281 = arith.addf %280, %26 : vector<16x16xf32>
    %cst_94 = arith.constant dense<0xFF800000> : vector<16xf32>
    %282 = vector.multi_reduction <maximumf>, %281, %cst_94 [1] : vector<16x16xf32> to vector<16xf32>
    %283 = vector.shape_cast %282 : vector<16xf32> to vector<16x1xf32>
    %284 = vector.broadcast %283 : vector<16x1xf32> to vector<16x16xf32>
    %285 = arith.subf %281, %284 : vector<16x16xf32>
    %286 = math.exp %285 : vector<16x16xf32>
    %cst_95 = arith.constant dense<0.000000e+00> : vector<16xf32>
    %287 = vector.multi_reduction <add>, %286, %cst_95 [1] : vector<16x16xf32> to vector<16xf32>
    %288 = vector.shape_cast %287 : vector<16xf32> to vector<16x1xf32>
    %289 = tpu.reciprocal %288 {approx = true} : vector<16x1xf32> -> vector<16x1xf32>
    %290 = vector.broadcast %289 : vector<16x1xf32> to vector<16x16xf32>
    %291 = arith.mulf %286, %290 : vector<16x16xf32>
    %292 = arith.truncf %291 : vector<16x16xf32> to vector<16x16xbf16>
    %cst_96 = arith.constant dense<0.000000e+00> : vector<16x16xf32>
    %293 = tpu.matmul %292, %278, %cst_96 {dimension_numbers = #tpu.dot_dimension_numbers<[1], [0], [0], [1], [0, 0, 1, 1], [], []>} : vector<16x16xbf16>, vector<16x16xbf16>, vector<16x16xf32> -> vector<16x16xf32>
    %294 = tpu.concatenate %239, %257, %275, %293 in 1 : vector<16x16xf32>, vector<16x16xf32>, vector<16x16xf32>, vector<16x16xf32> -> vector<16x64xf32>
    %295 = arith.truncf %294 : vector<16x64xf32> to vector<16x64xbf16>
    %c1_97 = arith.constant 1 : index
    %c0_98 = arith.constant 0 : index
    %c0_99 = arith.constant 0 : index
    %296 = vector.load %arg6[%c1_97, %c0_98, %c0_99] : memref<2x64x64xbf16, #tpu.memory_space<vmem>>, vector<1x64x64xbf16>
    %297 = vector.shape_cast %296 : vector<1x64x64xbf16> to vector<64x64xbf16>
    %cst_100 = arith.constant dense<0.000000e+00> : vector<16x64xf32>
    %298 = tpu.matmul %295, %297, %cst_100 {dimension_numbers = #tpu.dot_dimension_numbers<[1], [0], [0], [1], [0, 0, 1, 1], [], []>} : vector<16x64xbf16>, vector<64x64xbf16>, vector<16x64xf32> -> vector<16x64xf32>
    %299 = arith.addf %186, %298 : vector<16x64xf32>
    %c1_101 = arith.constant 1 : index
    %c0_102 = arith.constant 0 : index
    %c0_103 = arith.constant 0 : index
    %300 = vector.load %arg7[%c1_101, %c0_102, %c0_103] : memref<2x1x64xf32, #tpu.memory_space<vmem>>, vector<1x1x64xf32>
    %301 = vector.shape_cast %300 : vector<1x1x64xf32> to vector<1x64xf32>
    %302 = vector.broadcast %301 : vector<1x64xf32> to vector<16x64xf32>
    %303 = arith.addf %299, %302 : vector<16x64xf32>
    %304 = vector.extract_strided_slice %188 {offsets = [2, 0], sizes = [1, 64], strides = [1, 1]} : vector<4x64xf32> to vector<1x64xf32>
    %305 = vector.extract_strided_slice %188 {offsets = [3, 0], sizes = [1, 64], strides = [1, 1]} : vector<4x64xf32> to vector<1x64xf32>
    %cst_104 = arith.constant dense<0.000000e+00> : vector<16xf32>
    %306 = vector.multi_reduction <add>, %303, %cst_104 [1] : vector<16x64xf32> to vector<16xf32>
    %307 = vector.shape_cast %306 : vector<16xf32> to vector<16x1xf32>
    %cst_105 = arith.constant 6.400000e+01 : f32
    %308 = vector.broadcast %cst_105 : f32 to vector<16x1xf32>
    %309 = arith.divf %307, %308 : vector<16x1xf32>
    %310 = vector.broadcast %309 : vector<16x1xf32> to vector<16x64xf32>
    %311 = arith.subf %303, %310 : vector<16x64xf32>
    %312 = arith.mulf %311, %311 : vector<16x64xf32>
    %cst_106 = arith.constant dense<0.000000e+00> : vector<16xf32>
    %313 = vector.multi_reduction <add>, %312, %cst_106 [1] : vector<16x64xf32> to vector<16xf32>
    %314 = vector.shape_cast %313 : vector<16xf32> to vector<16x1xf32>
    %cst_107 = arith.constant 6.400000e+01 : f32
    %315 = vector.broadcast %cst_107 : f32 to vector<16x1xf32>
    %316 = arith.divf %314, %315 : vector<16x1xf32>
    %317 = vector.broadcast %309 : vector<16x1xf32> to vector<16x64xf32>
    %318 = arith.subf %303, %317 : vector<16x64xf32>
    %cst_108 = arith.constant 9.99999974E-6 : f32
    %319 = vector.broadcast %cst_108 : f32 to vector<16x1xf32>
    %320 = arith.addf %316, %319 : vector<16x1xf32>
    %321 = math.rsqrt %320 : vector<16x1xf32>
    %322 = vector.broadcast %321 : vector<16x1xf32> to vector<16x64xf32>
    %323 = arith.mulf %318, %322 : vector<16x64xf32>
    %324 = vector.broadcast %304 : vector<1x64xf32> to vector<16x64xf32>
    %325 = arith.mulf %323, %324 : vector<16x64xf32>
    %326 = vector.broadcast %305 : vector<1x64xf32> to vector<16x64xf32>
    %327 = arith.addf %325, %326 : vector<16x64xf32>
    %328 = arith.truncf %327 : vector<16x64xf32> to vector<16x64xbf16>
    %c1_109 = arith.constant 1 : index
    %c0_110 = arith.constant 0 : index
    %c0_111 = arith.constant 0 : index
    %329 = vector.load %arg8[%c1_109, %c0_110, %c0_111] : memref<2x64x256xbf16, #tpu.memory_space<vmem>>, vector<1x64x256xbf16>
    %330 = vector.shape_cast %329 : vector<1x64x256xbf16> to vector<64x256xbf16>
    %cst_112 = arith.constant dense<0.000000e+00> : vector<16x256xf32>
    %331 = tpu.matmul %328, %330, %cst_112 {dimension_numbers = #tpu.dot_dimension_numbers<[1], [0], [0], [1], [0, 0, 1, 1], [], []>} : vector<16x64xbf16>, vector<64x256xbf16>, vector<16x256xf32> -> vector<16x256xf32>
    %c1_113 = arith.constant 1 : index
    %c0_114 = arith.constant 0 : index
    %c0_115 = arith.constant 0 : index
    %332 = vector.load %arg9[%c1_113, %c0_114, %c0_115] : memref<2x1x256xf32, #tpu.memory_space<vmem>>, vector<1x1x256xf32>
    %333 = vector.shape_cast %332 : vector<1x1x256xf32> to vector<1x256xf32>
    %334 = vector.broadcast %333 : vector<1x256xf32> to vector<16x256xf32>
    %335 = arith.addf %331, %334 : vector<16x256xf32>
    %cst_116 = arith.constant 0.000000e+00 : f32
    %336 = vector.broadcast %cst_116 : f32 to vector<16x256xf32>
    %337 = arith.maximumf %335, %336 : vector<16x256xf32>
    %338 = arith.truncf %337 : vector<16x256xf32> to vector<16x256xbf16>
    %c1_117 = arith.constant 1 : index
    %c0_118 = arith.constant 0 : index
    %c0_119 = arith.constant 0 : index
    %339 = vector.load %arg10[%c1_117, %c0_118, %c0_119] : memref<2x256x64xbf16, #tpu.memory_space<vmem>>, vector<1x256x64xbf16>
    %340 = vector.shape_cast %339 : vector<1x256x64xbf16> to vector<256x64xbf16>
    %cst_120 = arith.constant dense<0.000000e+00> : vector<16x64xf32>
    %341 = tpu.matmul %338, %340, %cst_120 {dimension_numbers = #tpu.dot_dimension_numbers<[1], [0], [0], [1], [0, 0, 1, 1], [], []>} : vector<16x256xbf16>, vector<256x64xbf16>, vector<16x64xf32> -> vector<16x64xf32>
    %c1_121 = arith.constant 1 : index
    %c0_122 = arith.constant 0 : index
    %c0_123 = arith.constant 0 : index
    %342 = vector.load %arg11[%c1_121, %c0_122, %c0_123] : memref<2x1x64xf32, #tpu.memory_space<vmem>>, vector<1x1x64xf32>
    %343 = vector.shape_cast %342 : vector<1x1x64xf32> to vector<1x64xf32>
    %344 = vector.broadcast %343 : vector<1x64xf32> to vector<16x64xf32>
    %345 = arith.addf %341, %344 : vector<16x64xf32>
    %346 = arith.addf %303, %345 : vector<16x64xf32>
    %c0_124 = arith.constant 0 : index
    %c0_125 = arith.constant 0 : index
    %347 = vector.load %arg12[%c0_124, %c0_125] : memref<2x64xf32, #tpu.memory_space<vmem>>, vector<1x64xf32>
    %c1_126 = arith.constant 1 : index
    %c0_127 = arith.constant 0 : index
    %348 = vector.load %arg12[%c1_126, %c0_127] : memref<2x64xf32, #tpu.memory_space<vmem>>, vector<1x64xf32>
    %cst_128 = arith.constant dense<0.000000e+00> : vector<16xf32>
    %349 = vector.multi_reduction <add>, %346, %cst_128 [1] : vector<16x64xf32> to vector<16xf32>
    %350 = vector.shape_cast %349 : vector<16xf32> to vector<16x1xf32>
    %cst_129 = arith.constant 6.400000e+01 : f32
    %351 = vector.broadcast %cst_129 : f32 to vector<16x1xf32>
    %352 = arith.divf %350, %351 : vector<16x1xf32>
    %353 = vector.broadcast %352 : vector<16x1xf32> to vector<16x64xf32>
    %354 = arith.subf %346, %353 : vector<16x64xf32>
    %355 = arith.mulf %354, %354 : vector<16x64xf32>
    %cst_130 = arith.constant dense<0.000000e+00> : vector<16xf32>
    %356 = vector.multi_reduction <add>, %355, %cst_130 [1] : vector<16x64xf32> to vector<16xf32>
    %357 = vector.shape_cast %356 : vector<16xf32> to vector<16x1xf32>
    %cst_131 = arith.constant 6.400000e+01 : f32
    %358 = vector.broadcast %cst_131 : f32 to vector<16x1xf32>
    %359 = arith.divf %357, %358 : vector<16x1xf32>
    %360 = vector.broadcast %352 : vector<16x1xf32> to vector<16x64xf32>
    %361 = arith.subf %346, %360 : vector<16x64xf32>
    %cst_132 = arith.constant 9.99999974E-6 : f32
    %362 = vector.broadcast %cst_132 : f32 to vector<16x1xf32>
    %363 = arith.addf %359, %362 : vector<16x1xf32>
    %364 = math.rsqrt %363 : vector<16x1xf32>
    %365 = vector.broadcast %364 : vector<16x1xf32> to vector<16x64xf32>
    %366 = arith.mulf %361, %365 : vector<16x64xf32>
    %367 = vector.broadcast %347 : vector<1x64xf32> to vector<16x64xf32>
    %368 = arith.mulf %366, %367 : vector<16x64xf32>
    %369 = vector.broadcast %348 : vector<1x64xf32> to vector<16x64xf32>
    %370 = arith.addf %368, %369 : vector<16x64xf32>
    %371 = arith.truncf %370 : vector<16x64xf32> to vector<16x64xbf16>
    %c0_133 = arith.constant 0 : index
    %c0_134 = arith.constant 0 : index
    %372 = vector.load %arg13[%c0_133, %c0_134] : memref<64x128xbf16, #tpu.memory_space<vmem>>, vector<64x128xbf16>
    %cst_135 = arith.constant dense<0.000000e+00> : vector<16x128xf32>
    %373 = tpu.matmul %371, %372, %cst_135 {dimension_numbers = #tpu.dot_dimension_numbers<[1], [0], [0], [1], [0, 0, 1, 1], [], []>} : vector<16x64xbf16>, vector<64x128xbf16>, vector<16x128xf32> -> vector<16x128xf32>
    %c0_136 = arith.constant 0 : index
    %c0_137 = arith.constant 0 : index
    %374 = vector.load %arg14[%c0_136, %c0_137] : memref<1x128xf32, #tpu.memory_space<vmem>>, vector<1x128xf32>
    %375 = vector.broadcast %374 : vector<1x128xf32> to vector<16x128xf32>
    %376 = arith.addf %373, %375 : vector<16x128xf32>
    %c0_138 = arith.constant 0 : index
    %c0_139 = arith.constant 0 : index
    %377 = vector.load %arg15[%c0_138, %c0_139] : memref<16x128xf32, #tpu.memory_space<vmem>>, vector<16x128xf32>
    tpu.vector_store %arg15[%c0_138, %c0_139], %376 {strides = array<i32>} : memref<16x128xf32, #tpu.memory_space<vmem>>, vector<16x128xf32>,
    return
  }
}

</mosaic_0001>

<bundles_post_ra>
// kernel: _forward_logits.1
= control target key start
LH: loop header
LB: loop body
LE: loop exit
PB: predicated region body
PF: predicated region fallthrough
CT: control target
= control target key end

     0   :  { %v3095_v0 = vmov 0   ;;  %v3096_v2 = vmov 0.0   ;;  %vm3097_vm0 = vmmov 0   ;;  %v53_v8 = vlaneseq  ;;  %s3098_s18 = smov 96   ;;  %s3099_s19 = smov 64   ;;  %s3823_s0 = inlined_call_operand.vmem [shape: s32[16,1], index: 0, kind: input, shape index: {}]   ;;  %s3824_s1 = inlined_call_operand.vmem [shape: bf16[64,64], index: 1, kind: input, shape index: {}]   ;;  %s3825_s2 = inlined_call_operand.vmem [shape: f32[16,64], index: 2, kind: input, shape index: {}]   ;;  %s3826_s4 = inlined_call_operand.vmem [shape: bf16[2,64,192], index: 4, kind: input, shape index: {}]   ;;  %s3827_s3 = inlined_call_operand.vmem [shape: f32[2,4,64], index: 3, kind: input, shape index: {}]   ;;  %s3828_s5 = inlined_call_operand.vmem [shape: f32[2,1,192], index: 5, kind: input, shape index: {}]   ;;  %s3829_s6 = inlined_call_operand.vmem [shape: bf16[2,64,64], index: 6, kind: input, shape index: {}]   ;;  %s3830_s7 = inlined_call_operand.vmem [shape: f32[2,1,64], index: 7, kind: input, shape index: {}]   ;;  %s3831_s8 = inlined_call_operand.vmem [shape: bf16[2,64,256], index: 8, kind: input, shape index: {}]   ;;  %s3832_s10 = inlined_call_operand.vmem [shape: bf16[2,256,64], index: 10, kind: input, shape index: {}]   ;;  %s3833_s9 = inlined_call_operand.vmem [shape: f32[2,1,256], index: 9, kind: input, shape index: {}]   ;;  %s3834_s11 = inlined_call_operand.vmem [shape: f32[2,1,64], index: 11, kind: input, shape index: {}]   ;;  %s3835_s13 = inlined_call_operand.vmem [shape: bf16[64,128], index: 13, kind: input, shape index: {}]   ;;  %s3836_s12 = inlined_call_operand.vmem [shape: f32[2,64], index: 12, kind: input, shape index: {}]   ;;  %s3837_s14 = inlined_call_operand.vmem [shape: f32[1,128], index: 14, kind: input, shape index: {}]   ;;  %s3838_s15 = inlined_call_operand.vmem [shape: f32[16,128], index: 15, kind: output, shape index: {}]  }
   0x1   :  { %2884 = vset.pattern.permute.xlu0 %v3095_v0  ;;  %v51_v1 = vld [vmem:[%s3823_s0] sm:$0xff]  ;;  %2729 = vmatprep.subr.bf16.mxu0 %v3096_v2  ;;  %v2915_v3 = vld [vmem:[%s3824_s1 + $0x18] sm:$0xff]   ;;  %v52_v4 = vld [vmem:[%s3823_s0 + $0x8] sm:$0xff]  ;;  %vm102_vm3 = vcmask 523264   ;;  %s3100_s20 = smov 48   ;;  %s3101_s21 = smov 112  }
   0x2   :  { %56 = vperm.xlu0 %2884, %v51_v1   ;;  %300 = vmatprep.mubr.bf16.mxu1 %v3095_v0  ;;  %v2916_v5 = vld [vmem:[%s3824_s1 + $0x10] sm:$0xff]   ;;  %v2917_v6 = vld [vmem:[%s3824_s1 + $0x8] sm:$0xff]   ;;  %v2918_v7 = vld [vmem:[%s3824_s1] sm:$0xff]   ;;  %v3213_v9 = vand.u32 127, %v53_v8  ;;  %v3265_v49 = vshrl.u32 %v53_v8, 7  ;;  %s3102_s22 = smov 32  }
   0x3   :  { %2730 = vmatpush3.bf16.msra.mxu0 %v2915_v3  ;;  %2737 = vmatprep.mubr.msk.bf16.mxu0 %vm3097_vm0, %v3096_v2  ;;  %v76_v15 = vld [vmem:[%s3825_s2] sm:$0xff]  ;;  %v77_v19 = vld [vmem:[%s3825_s2 + $0x8] sm:$0xff]  ;;  %v2919_v35 = vld [vmem:[%s3826_s4 + $0x34] ss:$8 sps:$4 sm:$0xff]   ;;  %s3103_s23 = smov 16   ;;  %s3104_s24 = smov 80  }
   0x4   :  { %2731 = vmatprep.subr.bf16.mxu0 %v3096_v2  ;;  %v2921_v36 = vld [vmem:[%s3826_s4 + $0x30] ss:$8 sps:$4 sm:$0xff]   ;;  %276 = vmatprep.subr.bf16.mxu1 %v2919_v35  ;;  %v2922_v37 = vld [vmem:[%s3826_s4 + $0x24] ss:$8 sps:$4 sm:$0xff]   ;;  %v2924_v38 = vld [vmem:[%s3826_s4 + $0x20] ss:$8 sps:$4 sm:$0xff]  }
   0x5   :  { %277 = vmatpush1.bf16.msra.mxu1 %v2921_v36  ;;  %v2925_v39 = vld [vmem:[%s3826_s4 + $0x14] ss:$8 sps:$4 sm:$0xff]   ;;  %v2927_v40 = vld [vmem:[%s3826_s4 + $0x10] ss:$8 sps:$4 sm:$0xff]   ;;  %v2928_v41 = vld [vmem:[%s3826_s4 + $0x4] ss:$8 sps:$4 sm:$0xff]  }
   0x6   :  { %59 = vperm.xlu0 %2884, %v52_v4   ;;  %278 = vmatprep.subr.bf16.mxu1 %v2922_v37  ;;  %v2930_v42 = vld [vmem:[%s3826_s4] ss:$8 sps:$4 sm:$0xff]   ;;  %v3268_v50 = vsub.s32 0, %v3265_v49  ;;  %v3278_v55 = vsub.s32 1, %v3265_v49  ;;  %vm316_vm4 = vcmask 130048   ;;  %vm821_vm11 = vcmask 261120  }
   0x7   :  { %2732 = vmatpush3.bf16.msra.mxu0 %v2916_v5  ;;  %v3273_v51 = vld [vmem:[%s3827_s3] sm:$0xf]  ;;  %v3105_v36 = vmov -1e+30   ;;  %vm824_vm12 = vcmask 392192  }
   0x8   :  { %2733 = vmatprep.subr.bf16.mxu0 %v3096_v2  ;;  %v195_v54 = vrot.slane %v3273_v51, %v3268_v50  ;;  %v201_v59 = vrot.slane %v3273_v51, %v3278_v55  ;;  %v213_v1 = vld [vmem:[%s3828_s5] sm:$0x3] }
   0x9   :  { %279 = vmatpush1.bf16.msra.mxu1 %v2924_v38  ;;  %v218_v4 = vrot.slane %v213_v1, %v3268_v50 }
   0xa   :  { %280 = vmatprep.subr.bf16.mxu1 %v2925_v39 }
   0xb   :  { %2734 = vmatpush3.bf16.msra.mxu0 %v2917_v6 }
   0xc   :  { %2735 = vmatprep.subr.bf16.mxu0 %v3096_v2 }
   0xd   :  { %281 = vmatpush1.bf16.msra.mxu1 %v2927_v40 }
   0xe   :  { %282 = vmatprep.subr.bf16.mxu1 %v2928_v41 }
   0xf   :  { %2736 = vmatpush3.bf16.msra.mxu0 %v2918_v7 }
  0x10   :  { %2753 = vmatprep.subr.bf16.mxu0 %v3096_v2 }
  0x11   :  { %283 = vmatpush1.bf16.msra.mxu1 %v2930_v42 }
  0x12   :  { %2741 = vmatprep.subr.bf16.mxu1 %v3096_v2 }
  0x7d   :  { %v57_v10 = vpop.permute.xlu0 %56 }
  0x7e   :  { %vm61_vm1 = vcmp.eq.s32.totalorder %v57_v10, %v3213_v9 }
  0x7f   :  { %v2459_v12 = vsel %vm61_vm1, 1.0, %v3096_v2 }
  0x81   :  { %v60_v11 = vpop.permute.xlu0 %59 }
  0x82   :  { %vm62_vm2 = vcmp.eq.s32.totalorder %v60_v11, %v3213_v9 }
  0x83   :  { %v2460_v13 = vsel %vm62_vm2, 1.0, %v3096_v2 }
  0x84   :  { %v67_v14 = vpack.c.bf16 %v2460_v13, %v2459_v12 }
  0x86   :  { %2738 = vmatmul.mubr.msk.bf16.vlgmr.msra.gmra.mxu0 %vm102_vm3, %v67_v14  ;;  %v222_v14 = vrot.slane %v213_v1, %v3278_v55 }
  0x87   :  { %2755 = vmatprep.mubr.msk.bf16.mxu0 %vm3097_vm0, %v3096_v2 }
 0x146   :  { %v140_v16 = vpop.f32.mrf.mxu0 }
 0x147   :  { %v3225_v17 = vadd.f32 %v140_v16, %v76_v15 }
 0x148   :  { %v2739_v18 = vpop.f32.mrf.mxu0 }
 0x149   :  { %v165_v20 = vsel %vm102_vm3, %v3225_v17, 0.0 }
 0x14a   :  { %166 = vadd.xlane.f32.xlu1 %v165_v20  ;;  %v143_v21 = vpop.f32.mrf.mxu0 }
 0x14b   :  { %v3232_v22 = vadd.f32 %v143_v21, %v77_v19 }
 0x14c   :  { %v2740_v23 = vpop.f32.mrf.mxu0 }
 0x14d   :  { %v168_v24 = vsel %vm102_vm3, %v3232_v22, 0.0 }
 0x14e   :  { %169 = vadd.xlane.f32.xlu1 %v168_v24 }
 0x1d3   :  { %v167_v25 = vpop.xlane.xlu1 %166 }
 0x1d4   :  { %v172_v26 = vmul.f32 0.015625, %v167_v25 }
 0x1d6   :  { %v174_v27 = vsub.f32 %v3225_v17, %v172_v26 }
 0x1d7   :  { %v170_v28 = vpop.xlane.xlu1 %169 }
 0x1d8   :  { %v173_v29 = vmul.f32 0.015625, %v170_v28  ;;  %v176_v30 = vmul.f32 %v174_v27, %v174_v27 }
 0x1da   :  { %v175_v31 = vsub.f32 %v3232_v22, %v173_v29  ;;  %v178_v32 = vsel %vm102_vm3, %v176_v30, 0.0  ;;  %v152_v29 = vshra.s32 %v3213_v9, 3  ;;  %v157_v30 = vand.u32 7, %v3213_v9 }
 0x1db   :  { %179 = vadd.xlane.f32.xlu0 %v178_v32  ;;  %v155_v32 = vand.u32 7, %v3265_v49 }
 0x1dc   :  { %v177_v33 = vmul.f32 %v175_v31, %v175_v31 }
 0x1dd   :  { %vm158_vm6 = vcmp.ge.s32.totalorder %v155_v32, %v157_v30 }
 0x1de   :  { %v181_v34 = vsel %vm102_vm3, %v177_v33, 0.0  ;;  %v149_v33 = vadd.s32 8, %v3265_v49 }
 0x1df   :  { %182 = vadd.xlane.f32.xlu1 %v181_v34 }
 0x1e0   :  { %v151_v34 = vshra.s32 %v149_v33, 3  ;;  %v156_v35 = vand.u32 7, %v149_v33 }
 0x1e2   :  { %vm154_vm8 = vcmp.eq.s32.totalorder %v151_v34, %v152_v29  ;;  %vm159_vm9 = vcmp.ge.s32.totalorder %v156_v35, %v157_v30 }
 0x1e3   :  { %vm161_vm10 = vmand %vm154_vm8, %vm159_vm9 }
 0x1e4   :  { %v3329_v40 = vsel %vm161_vm10, 0.0, %v3105_v36 }
 0x264   :  { %v180_v43 = vpop.xlane.xlu0 %179 }
 0x265   :  { %v184_v44 = vmul.f32 0.015625, %v180_v43 }
 0x267   :  { %v186_v45 = vadd.f32 1e-05, %v184_v44 }
 0x268   :  { %v183_v46 = vpop.xlane.xlu1 %182 }
 0x269   :  { %3011 = vrsqrt.f32 %v186_v45  ;;  %v185_v47 = vmul.f32 0.015625, %v183_v46 }
 0x26b   :  { %v187_v48 = vadd.f32 1e-05, %v185_v47 }
 0x26d   :  { %3013 = vrsqrt.f32 %v187_v48 }
 0x276   :  { %v3012_v52 = vpop.eup %3011 }
 0x277   :  { %v190_v53 = vmul.f32 %v3012_v52, %v174_v27 }
 0x279   :  { %v196_v58 = vmul.f32 %v195_v54, %v190_v53 }
 0x27a   :  { %v3014_v56 = vpop.eup %3013 }
 0x27b   :  { %v191_v57 = vmul.f32 %v3014_v56, %v175_v31  ;;  %v202_v61 = vadd.f32 %v201_v59, %v196_v58  ;;  %v150_v31 = vshra.s32 %v3265_v49, 3 }
 0x27d   :  { %v197_v60 = vmul.f32 %v195_v54, %v191_v57  ;;  %vm153_vm5 = vcmp.eq.s32.totalorder %v150_v31, %v152_v29 }
 0x27e   :  { %vm160_vm7 = vmand %vm153_vm5, %vm158_vm6 }
 0x27f   :  { %v203_v62 = vadd.f32 %v201_v59, %v197_v60  ;;  %v3326_v37 = vsel %vm160_vm7, 0.0, %v3105_v36 }
 0x281   :  { %v204_v63 = vpack.c.bf16 %v203_v62, %v202_v61 }
 0x283   :  { %2474 = vmatmul.mubr.msk.bf16.vlgmr.msra.gmra.mxu1 %vm102_vm3, %v204_v63 }
 0x284   :  { %2743 = vmatprep.mubr.msk.bf16.mxu1 %vm3097_vm0, %v3096_v2 }
 0x343   :  { %v302_v3 = vpop.f32.mrf.mxu1 }
 0x344   :  { %v303_v7 = vadd.f32 %v302_v3, %v218_v4 }
 0x345   :  { %v304_v5 = vpop.f32.mrf.mxu1 }
 0x346   :  { %v305_v19 = vadd.f32 %v304_v5, %v222_v14 }
 0x347   :  { %v306_v6 = vpop.f32.mrf.mxu1 }
 0x348   :  { %v307_v8 = vadd.f32 %v306_v6, %v218_v4 }
 0x349   :  { %v308_v12 = vpop.f32.mrf.mxu1 }
 0x34a   :  { %v311_v10 = vpack.c.bf16 %v307_v8, %v303_v7  ;;  %v309_v15 = vadd.f32 %v308_v12, %v222_v14 }
 0x34c   :  { %553 = vrot.lane.b32.xlu0 %v311_v10, %s3098_s18  ;;  %314 = vrot.lane.b32.xlu1 %v311_v10, %s3099_s19  ;;  %v3301_v20 = vpack.c.bf16 %v309_v15, %v305_v19 }
 0x350   :  { %433 = vrot.lane.b32.xlu1 %v311_v10, %s3100_s20 }
 0x354   :  { %431 = vrot.lane.b32.xlu1 %v311_v10, %s3101_s21 }
 0x358   :  { %555 = vrot.lane.b32.xlu1 %v311_v10, %s3102_s22 }
 0x35c   :  { %676 = vrot.lane.b32.xlu1 %v311_v10, %s3103_s23 }
 0x360   :  { %674 = vrot.lane.b32.xlu1 %v311_v10, %s3104_s24 }
 0x3be   :  { %v315_v11 = vpop.permute.xlu1 %314  ;;  %v554_v26 = vpop.permute.xlu0 %553 }
 0x3bf   :  { %v321_v13 = vsel %vm316_vm4, %v315_v11, 0 }
 0x3c0   :  { %2742 = vmatpush3.bf16.xpose.msra.mxu1 %v321_v13 }
 0x3c1   :  { %2747 = vmatprep.subr.bf16.mxu1 %v3096_v2 }
 0x3c2   :  { %v434_v16 = vpop.permute.xlu1 %433 }
 0x3c3   :  { %v439_v18 = vsel %vm316_vm4, %v434_v16, 0 }
 0x3c4   :  { %2754 = vmatpush3.bf16.xpose.msra.mxu0 %v439_v18 }
 0x3c5   :  { %2765 = vmatprep.subr.bf16.mxu0 %v3096_v2 }
 0x3c6   :  { %v432_v21 = vpop.permute.xlu1 %431 }
 0x3c7   :  { %2744 = vmatmul.mubr.msk.bf16.vlgmr.msra.gmra.mxu1 %vm316_vm4, %v311_v10 }
 0x3c8   :  { %2748 = vmatpush3.bf16.msra.mxu1 %v3301_v20  ;;  %2749 = vmatprep.mubr.msk.bf16.mxu1 %vm3097_vm0, %v3096_v2 }
 0x3c9   :  { %2759 = vmatprep.subr.bf16.mxu1 %v3096_v2 }
 0x3ca   :  { %v556_v23 = vpop.permute.xlu1 %555 }
 0x3cb   :  { %v561_v24 = vsel %vm316_vm4, %v556_v23, 0  ;;  %2756 = vmatmul.mubr.msk.bf16.vlgmr.msra.gmra.mxu0 %vm316_vm4, %v432_v21 }
 0x3cc   :  { %2766 = vmatpush3.bf16.xpose.msra.mxu0 %v561_v24  ;;  %2767 = vmatprep.mubr.msk.bf16.mxu0 %vm3097_vm0, %v3096_v2 }
 0x3cd   :  { %2777 = vmatprep.subr.bf16.mxu0 %v3096_v2 }
 0x3ce   :  { %v677_v25 = vpop.permute.xlu1 %676 }
 0x3cf   :  { %v682_v27 = vsel %vm316_vm4, %v677_v25, 0 }
 0x3d2   :  { %v675_v28 = vpop.permute.xlu1 %674 }
 0x3d3   :  { %2768 = vmatmul.mubr.msk.bf16.vlgmr.msra.gmra.mxu0 %vm316_vm4, %v554_v26 }
 0x3d4   :  { %2778 = vmatpush3.bf16.xpose.msra.mxu0 %v682_v27  ;;  %2779 = vmatprep.mubr.msk.bf16.mxu0 %vm3097_vm0, %v3096_v2 }
 0x3d5   :  { %2789 = vmatprep.subr.bf16.mxu0 %v3096_v2 }
 0x3db   :  { %2780 = vmatmul.mubr.msk.bf16.vlgmr.msra.gmra.mxu0 %vm316_vm4, %v675_v28 }
 0x3dc   :  { %2797 = vmatprep.mubr.msk.bf16.mxu0 %vm3097_vm0, %v3096_v2 }
 0x487   :  { %v357_v38 = vpop.f32.mrf.mxu1 }
 0x488   :  { %v358_v9 = vadd.f32 %v357_v38, %v3326_v37 }
 0x489   :  { %v2745_v39 = vpop.f32.mrf.mxu1 }
 0x48a   :  { %v364_v41 = vsel %vm316_vm4, %v358_v9, -inf }
 0x48b   :  { %365 = vmax.xlane.f32.xlu1 %v364_v41  ;;  %v360_v42 = vpop.f32.mrf.mxu1  ;;  %v475_v43 = vpop.f32.mrf.mxu0 }
 0x48c   :  { %v361_v44 = vadd.f32 %v360_v42, %v3329_v40  ;;  %v476_v45 = vadd.f32 %v475_v43, %v3326_v37 }
 0x48d   :  { %v2746_v46 = vpop.f32.mrf.mxu1  ;;  %v2757_v47 = vpop.f32.mrf.mxu0 }
 0x48e   :  { %v367_v48 = vsel %vm316_vm4, %v361_v44, -inf  ;;  %v482_v52 = vsel %vm316_vm4, %v476_v45, -inf }
 0x48f   :  { %368 = vmax.xlane.f32.xlu0 %v367_v48  ;;  %483 = vmax.xlane.f32.xlu1 %v482_v52  ;;  %v478_v53 = vpop.f32.mrf.mxu0 }
 0x490   :  { %v479_v54 = vadd.f32 %v478_v53, %v3329_v40 }
 0x491   :  { %v2758_v56 = vpop.f32.mrf.mxu0 }
 0x492   :  { %v485_v57 = vsel %vm316_vm4, %v479_v54, -inf }
 0x493   :  { %486 = vmax.xlane.f32.xlu1 %v485_v57  ;;  %v597_v58 = vpop.f32.mrf.mxu0 }
 0x494   :  { %v598_v59 = vadd.f32 %v597_v58, %v3326_v37 }
 0x495   :  { %v2769_v60 = vpop.f32.mrf.mxu0 }
 0x496   :  { %v604_v61 = vsel %vm316_vm4, %v598_v59, -inf }
 0x497   :  { %605 = vmax.xlane.f32.xlu0 %v604_v61  ;;  %v600_v62 = vpop.f32.mrf.mxu0 }
 0x498   :  { %v601_v63 = vadd.f32 %v600_v62, %v3329_v40 }
 0x499   :  { %v2770_v1 = vpop.f32.mrf.mxu0 }
 0x49a   :  { %v607_v3 = vsel %vm316_vm4, %v601_v63, -inf }
 0x49b   :  { %608 = vmax.xlane.f32.xlu1 %v607_v3  ;;  %v718_v4 = vpop.f32.mrf.mxu0 }
 0x49c   :  { %v719_v5 = vadd.f32 %v718_v4, %v3326_v37 }
 0x49d   :  { %v2781_v6 = vpop.f32.mrf.mxu0 }
 0x49e   :  { %v725_v7 = vsel %vm316_vm4, %v719_v5, -inf }
 0x49f   :  { %726 = vmax.xlane.f32.xlu0 %v725_v7  ;;  %v721_v8 = vpop.f32.mrf.mxu0 }
 0x4a0   :  { %v722_v10 = vadd.f32 %v721_v8, %v3329_v40 }
 0x4a1   :  { %v2782_v11 = vpop.f32.mrf.mxu0 }
 0x4a2   :  { %v728_v12 = vsel %vm316_vm4, %v722_v10, -inf }
 0x4a3   :  { %729 = vmax.xlane.f32.xlu1 %v728_v12 }
 0x514   :  { %v366_v13 = vpop.xlane.xlu1 %365 }
 0x515   :  { %v370_v14 = vsub.f32 %v358_v9, %v366_v13 }
 0x517   :  { %v372_v15 = vmul.f32 1.442695, %v370_v14 }
 0x518   :  { %v369_v16 = vpop.xlane.xlu0 %368  ;;  %v484_v18 = vpop.xlane.xlu1 %483 }
 0x519   :  { %3015 = vpow2.f32 %v372_v15  ;;  %v371_v19 = vsub.f32 %v361_v44, %v369_v16  ;;  %v488_v21 = vsub.f32 %v476_v45, %v484_v18 }
 0x51b   :  { %v374_v23 = vmul.f32 1.442695, %v371_v19  ;;  %v490_v24 = vmul.f32 1.442695, %v488_v21 }
 0x51c   :  { %v487_v25 = vpop.xlane.xlu1 %486 }
 0x51d   :  { %3017 = vpow2.f32 %v374_v23  ;;  %v489_v26 = vsub.f32 %v479_v54, %v487_v25 }
 0x51e   :  { %3019 = vpow2.f32 %v490_v24 }
 0x51f   :  { %v492_v27 = vmul.f32 1.442695, %v489_v26 }
 0x520   :  { %v606_v28 = vpop.xlane.xlu0 %605 }
 0x521   :  { %3021 = vpow2.f32 %v492_v27  ;;  %v610_v29 = vsub.f32 %v598_v59, %v606_v28 }
 0x523   :  { %v612_v30 = vmul.f32 1.442695, %v610_v29 }
 0x524   :  { %v609_v31 = vpop.xlane.xlu1 %608 }
 0x525   :  { %3023 = vpow2.f32 %v612_v30  ;;  %v611_v32 = vsub.f32 %v601_v63, %v609_v31 }
 0x526   :  { %v3016_v33 = vpop.eup %3015 }
 0x527   :  { %v614_v34 = vmul.f32 1.442695, %v611_v32  ;;  %v376_v35 = vsel %vm316_vm4, %v3016_v33, 0.0 }
 0x528   :  { %377 = vadd.xlane.f32.xlu0 %v376_v35  ;;  %v727_v36 = vpop.xlane.xlu0 %726 }
 0x529   :  { %3025 = vpow2.f32 %v614_v34  ;;  %v731_v38 = vsub.f32 %v719_v5, %v727_v36 }
 0x52a   :  { %v3018_v9 = vpop.eup %3017 }
 0x52b   :  { %v3020_v39 = vpop.eup %3019  ;;  %v733_v41 = vmul.f32 1.442695, %v731_v38  ;;  %v379_v42 = vsel %vm316_vm4, %v3018_v9, 0.0 }
 0x52c   :  { %v494_v43 = vsel %vm316_vm4, %v3020_v39, 0.0  ;;  %380 = vadd.xlane.f32.xlu1 %v379_v42  ;;  %v730_v56 = vpop.xlane.xlu1 %729  ;;  %v2931_v42 = vld [vmem:[%s3829_s6 + $0x18] sm:$0xff]  }
 0x52d   :  { %3027 = vpow2.f32 %v733_v41  ;;  %495 = vadd.xlane.f32.xlu0 %v494_v43  ;;  %v732_v57 = vsub.f32 %v722_v10, %v730_v56  ;;  %2790 = vmatpush3.bf16.msra.mxu0 %v2931_v42  ;;  %v2943_v42 = vld [vmem:[%s3831_s8 + $0x14] ss:$8 sps:$4 sm:$0xff]  }
 0x52e   :  { %v3022_v44 = vpop.eup %3021  ;;  %2791 = vmatprep.subr.bf16.mxu0 %v3096_v2 }
 0x52f   :  { %v497_v45 = vsel %vm316_vm4, %v3022_v44, 0.0  ;;  %v735_v58 = vmul.f32 1.442695, %v732_v57 }
 0x530   :  { %498 = vadd.xlane.f32.xlu1 %v497_v45 }
 0x531   :  { %3029 = vpow2.f32 %v735_v58 }
 0x532   :  { %v3024_v46 = vpop.eup %3023 }
 0x533   :  { %v616_v47 = vsel %vm316_vm4, %v3024_v46, 0.0 }
 0x534   :  { %617 = vadd.xlane.f32.xlu0 %v616_v47  ;;  %v2933_v47 = vld [vmem:[%s3829_s6 + $0x8] sm:$0xff]  }
 0x536   :  { %v3026_v48 = vpop.eup %3025 }
 0x537   :  { %v619_v52 = vsel %vm316_vm4, %v3026_v48, 0.0 }
 0x538   :  { %620 = vadd.xlane.f32.xlu1 %v619_v52 }
 0x53a   :  { %v3028_v53 = vpop.eup %3027 }
 0x53b   :  { %v737_v54 = vsel %vm316_vm4, %v3028_v53, 0.0 }
 0x53c   :  { %738 = vadd.xlane.f32.xlu0 %v737_v54  ;;  %v2934_v54 = vld [vmem:[%s3829_s6] sm:$0xff]  }
 0x53e   :  { %v3030_v59 = vpop.eup %3029 }
 0x53f   :  { %v740_v60 = vsel %vm316_vm4, %v3030_v59, 0.0 }
 0x549   :  { %627 = vrot.lane.b32.xlu1 %v3301_v20, %s3098_s18 }
 0x552   :  { %506 = vrot.lane.b32.xlu0 %v3301_v20, %s3101_s21 }
 0x56d   :  { %741 = vadd.xlane.f32.xlu1 %v740_v60 }
 0x57e   :  { %748 = vrot.lane.b32.xlu1 %v3301_v20, %s3104_s24 }
 0x5b1   :  { %v378_v61 = vpop.xlane.xlu0 %377 }
 0x5b2   :  { %3031 = vrcp.f32 %v378_v61 }
 0x5b5   :  { %v381_v62 = vpop.xlane.xlu1 %380 }
 0x5b6   :  { %3033 = vrcp.f32 %v381_v62  ;;  %v496_v63 = vpop.xlane.xlu0 %495 }
 0x5b9   :  { %v499_v1 = vpop.xlane.xlu1 %498 }
 0x5ba   :  { %3035 = vrcp.f32 %v499_v1 }
 0x5bb   :  { %3037 = vrcp.f32 %v496_v63 }
 0x5bd   :  { %v618_v4 = vpop.xlane.xlu0 %617 }
 0x5bf   :  { %v3032_v3 = vpop.eup %3031 }
 0x5c0   :  { %v384_v7 = vmul.f32 %v3032_v3, %v3016_v33 }
 0x5c1   :  { %v621_v5 = vpop.xlane.xlu1 %620 }
 0x5c2   :  { %3039 = vrcp.f32 %v621_v5 }
 0x5c3   :  { %v3034_v6 = vpop.eup %3033  ;;  %3041 = vrcp.f32 %v618_v4 }
 0x5c4   :  { %v385_v8 = vmul.f32 %v3034_v6, %v3018_v9 }
 0x5c5   :  { %v739_v10 = vpop.xlane.xlu0 %738  ;;  %v628_v19 = vpop.permute.xlu1 %627 }
 0x5c6   :  { %v386_v11 = vpack.c.bf16 %v385_v8, %v384_v7  ;;  %3043 = vrcp.f32 %v739_v10 }
 0x5c7   :  { %v3036_v12 = vpop.eup %3035 }
 0x5c8   :  { %2750 = vmatmul.mubr.msk.bf16.vlgmr.msra.gmra.mxu1 %vm316_vm4, %v386_v11  ;;  %v3038_v20 = vpop.eup %3037  ;;  %v503_v14 = vmul.f32 %v3036_v12, %v3022_v44  ;;  %v2932_v44 = vld [vmem:[%s3829_s6 + $0x10] sm:$0xff]  }
 0x5c9   :  { %v507_v13 = vpop.permute.xlu0 %506  ;;  %2761 = vmatprep.mubr.msk.bf16.mxu1 %vm3097_vm0, %v3096_v2  ;;  %v502_v15 = vmul.f32 %v3038_v20, %v3020_v39  ;;  %2792 = vmatpush3.bf16.msra.mxu0 %v2932_v44  ;;  %v2946_v44 = vld [vmem:[%s3831_s8 + $0x4] ss:$8 sps:$4 sm:$0xff]  }
 0x5ca   :  { %2760 = vmatpush3.bf16.msra.mxu1 %v507_v13  ;;  %2793 = vmatprep.subr.bf16.mxu0 %v3096_v2 }
 0x5cb   :  { %2771 = vmatprep.subr.bf16.mxu1 %v3096_v2  ;;  %v504_v16 = vpack.c.bf16 %v503_v14, %v502_v15 }
 0x5cd   :  { %2794 = vmatpush3.bf16.msra.mxu0 %v2933_v47  ;;  %v2948_v47 = vld [vmem:[%s3832_s10 + $0x38] sm:$0xff]  }
 0x5ce   :  { %2795 = vmatprep.subr.bf16.mxu0 %v3096_v2 }
 0x5cf   :  { %v3040_v18 = vpop.eup %3039 }
 0x5d0   :  { %2762 = vmatmul.mubr.msk.bf16.vlgmr.msra.gmra.mxu1 %vm316_vm4, %v504_v16  ;;  %v3042_v21 = vpop.eup %3041  ;;  %v625_v23 = vmul.f32 %v3040_v18, %v3026_v48  ;;  %v2488_v16 = vld [vmem:[%s3830_s7] ss:$0 sm:$0xff] }
 0x5d1   :  { %2772 = vmatpush3.bf16.msra.mxu1 %v628_v19  ;;  %2773 = vmatprep.mubr.msk.bf16.mxu1 %vm3097_vm0, %v3096_v2  ;;  %v624_v24 = vmul.f32 %v3042_v21, %v3024_v46 }
 0x5d2   :  { %2783 = vmatprep.subr.bf16.mxu1 %v3096_v2  ;;  %2796 = vmatpush3.bf16.msra.mxu0 %v2934_v54  ;;  %v2952_v54 = vld [vmem:[%s3832_s10 + $0x28] sm:$0xff]  }
 0x5d3   :  { %v626_v25 = vpack.c.bf16 %v625_v23, %v624_v24  ;;  %v3044_v28 = vpop.eup %3043 }
 0x5d4   :  { %v745_v30 = vmul.f32 %v3044_v28, %v3028_v53 }
 0x5d8   :  { %2774 = vmatmul.mubr.msk.bf16.vlgmr.msra.gmra.mxu1 %vm316_vm4, %v626_v25 }
 0x5d9   :  { %2785 = vmatprep.mubr.msk.bf16.mxu1 %vm3097_vm0, %v3096_v2 }
 0x5f6   :  { %v742_v26 = vpop.xlane.xlu1 %741 }
 0x5f7   :  { %3045 = vrcp.f32 %v742_v26 }
 0x5fa   :  { %v749_v27 = vpop.permute.xlu1 %748 }
 0x5fb   :  { %2784 = vmatpush3.bf16.msra.mxu1 %v749_v27 }
 0x604   :  { %v3046_v29 = vpop.eup %3045 }
 0x605   :  { %v746_v31 = vmul.f32 %v3046_v29, %v3030_v59 }
 0x607   :  { %v747_v32 = vpack.c.bf16 %v746_v31, %v745_v30 }
 0x609   :  { %2786 = vmatmul.mubr.msk.bf16.vlgmr.msra.gmra.mxu1 %vm316_vm4, %v747_v32 }
 0x60a   :  { %1049 = vmatprep.mubr.bf16.mxu1 %v3095_v0 }
 0x688   :  { %v424_v33 = vpop.f32.mrf.mxu1 }
 0x68a   :  { %v2751_v34 = vpop.f32.mrf.mxu1 }
 0x68c   :  { %v427_v35 = vpop.f32.mrf.mxu1 }
 0x68e   :  { %v2752_v36 = vpop.f32.mrf.mxu1 }
 0x690   :  { %v546_v38 = vpop.f32.mrf.mxu1 }
 0x692   :  { %v2763_v9 = vpop.f32.mrf.mxu1 }
 0x693   :  { %v2935_v9 = vld [vmem:[%s3831_s8 + $0x30] ss:$8 sps:$4 sm:$0xff]  }
 0x694   :  { %v549_v39 = vpop.f32.mrf.mxu1 }
 0x695   :  { %v2885_v41 = vpack.i.bf16 %v549_v39, %v546_v38  ;;  %v2937_v38 = vld [vmem:[%s3831_s8 + $0x34] ss:$8 sps:$4 sm:$0xff]   ;;  %v2940_v39 = vld [vmem:[%s3831_s8 + $0x24] ss:$8 sps:$4 sm:$0xff]  }
 0x696   :  { %v2764_v43 = vpop.f32.mrf.mxu1  ;;  %1025 = vmatprep.subr.bf16.mxu1 %v2937_v38 }
 0x697   :  { %2886 = vrot.lane.b32.xlu0 %v2885_v41, %s3103_s23  ;;  %1026 = vmatpush1.bf16.msra.mxu1 %v2935_v9  ;;  %v2938_v41 = vld [vmem:[%s3831_s8 + $0x20] ss:$8 sps:$4 sm:$0xff]   ;;  %v2941_v43 = vld [vmem:[%s3831_s8 + $0x10] ss:$8 sps:$4 sm:$0xff]  }
 0x698   :  { %v667_v45 = vpop.f32.mrf.mxu1  ;;  %1027 = vmatprep.subr.bf16.mxu1 %v2940_v39 }
 0x69a   :  { %v2775_v46 = vpop.f32.mrf.mxu1 }
 0x69b   :  { %1028 = vmatpush1.bf16.msra.mxu1 %v2938_v41  ;;  %v2947_v46 = vld [vmem:[%s3832_s10 + $0x78] sm:$0xff]  }
 0x69c   :  { %v670_v48 = vpop.f32.mrf.mxu1  ;;  %1029 = vmatprep.subr.bf16.mxu1 %v2943_v42  ;;  %2659 = vmatprep.subr.bf16.mxu0 %v2947_v46 }
 0x69d   :  { %v2890_v52 = vpack.i.bf16 %v670_v48, %v667_v45  ;;  %v2944_v45 = vld [vmem:[%s3831_s8] ss:$8 sps:$4 sm:$0xff]   ;;  %v2949_v48 = vld [vmem:[%s3832_s10 + $0x70] sm:$0xff]  }
 0x69e   :  { %v2776_v53 = vpop.f32.mrf.mxu1 }
 0x69f   :  { %2891 = vrot.lane.b32.xlu1 %v2890_v52, %s3102_s22  ;;  %1030 = vmatpush1.bf16.msra.mxu1 %v2941_v43  ;;  %v2950_v52 = vld [vmem:[%s3832_s10 + $0x30] sm:$0xff]   ;;  %v2951_v53 = vld [vmem:[%s3832_s10 + $0x68] sm:$0xff]  }
 0x6a0   :  { %1031 = vmatprep.subr.bf16.mxu1 %v2946_v44  ;;  %v2498_v44 = vld [vmem:[%s3834_s11] ss:$0 sm:$0xff] }
 0x6a3   :  { %1032 = vmatpush1.bf16.msra.mxu1 %v2944_v45 }
 0x6c9   :  { %v788_v56 = vpop.f32.mrf.mxu1 }
 0x6cb   :  { %v2787_v57 = vpop.f32.mrf.mxu1 }
 0x6cc   :  { %v2954_v57 = vld [vmem:[%s3832_s10 + $0x20] sm:$0xff]  }
 0x6cd   :  { %v791_v58 = vpop.f32.mrf.mxu1 }
 0x6ce   :  { %v2895_v59 = vpack.i.bf16 %v791_v58, %v788_v56  ;;  %v2953_v56 = vld [vmem:[%s3832_s10 + $0x60] sm:$0xff]   ;;  %v2955_v58 = vld [vmem:[%s3832_s10 + $0x58] sm:$0xff]  }
 0x6cf   :  { %v2788_v60 = vpop.f32.mrf.mxu1 }
 0x6d0   :  { %2896 = vrot.lane.b32.xlu0 %v2895_v59, %s3100_s20  ;;  %v2956_v59 = vld [vmem:[%s3832_s10 + $0x18] sm:$0xff]  }
 0x709   :  { %v2887_v61 = vpop.permute.xlu0 %2886 }
 0x70a   :  { %v2889_v63 = vunpack.i.h.bf16 %v2887_v61  ;;  %v2888_v1 = vunpack.i.l.bf16 %v2887_v61 }
 0x70c   :  { %v820_v6 = vsel %vm316_vm4, %v427_v35, %v2889_v63  ;;  %v819_v7 = vsel %vm316_vm4, %v424_v33, %v2888_v1 }
 0x711   :  { %v2892_v62 = vpop.permute.xlu1 %2891 }
 0x712   :  { %v2894_v3 = vunpack.i.h.bf16 %v2892_v62  ;;  %v2893_v4 = vunpack.i.l.bf16 %v2892_v62 }
 0x714   :  { %v823_v11 = vsel %vm821_vm11, %v820_v6, %v2894_v3  ;;  %v822_v12 = vsel %vm821_vm11, %v819_v7, %v2893_v4  ;;  %v943_v4 = vsub.s32 2, %v3265_v49 }
 0x716   :  { %v944_v7 = vrot.slane %v3273_v51, %v943_v4 }
 0x742   :  { %v2897_v5 = vpop.permute.xlu0 %2896 }
 0x743   :  { %v2899_v8 = vunpack.i.h.bf16 %v2897_v5  ;;  %v2898_v10 = vunpack.i.l.bf16 %v2897_v5 }
 0x745   :  { %v825_v20 = vsel %vm824_vm12, %v822_v12, %v2898_v10  ;;  %v826_v13 = vsel %vm824_vm12, %v823_v11, %v2899_v8  ;;  %v949_v8 = vsub.s32 3, %v3265_v49  ;;  %v3003_v49 = vld [vmem:[%s3832_s10 + $0xc8] sm:$0xff]  }
 0x746   :  { %v827_v14 = vpack.c.bf16 %v826_v13, %v825_v20 }
 0x747   :  { %v950_v20 = vrot.slane %v3273_v51, %v949_v8  ;;  %v2959_v51 = vld [vmem:[%s3832_s10 + $0x48] sm:$0xff]  }
 0x748   :  { %2798 = vmatmul.mubr.msk.bf16.vlgmr.msra.gmra.mxu0 %vm102_vm3, %v827_v14 }
 0x749   :  { %2660 = vmatpush3.bf16.msra.mxu0 %v2948_v47 }
 0x74a   :  { %2661 = vmatprep.subr.bf16.mxu0 %v2949_v48 }
 0x74d   :  { %2662 = vmatpush3.bf16.msra.mxu0 %v2950_v52 }
 0x74e   :  { %2663 = vmatprep.subr.bf16.mxu0 %v2951_v53 }
 0x751   :  { %2664 = vmatpush3.bf16.msra.mxu0 %v2952_v54 }
 0x752   :  { %2665 = vmatprep.subr.bf16.mxu0 %v2953_v56 }
 0x755   :  { %2666 = vmatpush3.bf16.msra.mxu0 %v2954_v57 }
 0x756   :  { %2667 = vmatprep.subr.bf16.mxu0 %v2955_v58 }
 0x759   :  { %2668 = vmatpush3.bf16.msra.mxu0 %v2956_v59 }
 0x808   :  { %v897_v15 = vpop.f32.mrf.mxu0 }
 0x809   :  { %v904_v18 = vadd.f32 %v897_v15, %v3225_v17 }
 0x80a   :  { %v2799_v19 = vpop.f32.mrf.mxu0 }
 0x80b   :  { %v3402_v21 = vadd.f32 %v2488_v16, %v904_v18  ;;  %v2957_v18 = vld [vmem:[%s3832_s10 + $0x50] sm:$0xff]  }
 0x80c   :  { %v900_v23 = vpop.f32.mrf.mxu0  ;;  %v2958_v19 = vld [vmem:[%s3832_s10 + $0x10] sm:$0xff]   ;;  %2669 = vmatprep.subr.bf16.mxu0 %v2957_v18 }
 0x80d   :  { %v905_v24 = vadd.f32 %v900_v23, %v3232_v22  ;;  %v915_v25 = vsel %vm102_vm3, %v3402_v21, 0.0  ;;  %2670 = vmatpush3.bf16.msra.mxu0 %v2958_v19  ;;  %v2960_v23 = vld [vmem:[%s3832_s10 + $0x8] sm:$0xff]  }
 0x80e   :  { %916 = vadd.xlane.f32.xlu1 %v915_v25  ;;  %v2800_v26 = vpop.f32.mrf.mxu0  ;;  %2671 = vmatprep.subr.bf16.mxu0 %v2959_v51  ;;  %v2962_v25 = vld [vmem:[%s3832_s10] sm:$0xff]  }
 0x80f   :  { %v3407_v27 = vadd.f32 %v2488_v16, %v905_v24  ;;  %v2961_v24 = vld [vmem:[%s3832_s10 + $0x40] sm:$0xff]  }
 0x810   :  { %v962_v26 = vld [vmem:[%s3833_s9] sm:$0x3] }
 0x811   :  { %v918_v28 = vsel %vm102_vm3, %v3407_v27, 0.0  ;;  %2672 = vmatpush3.bf16.msra.mxu0 %v2960_v23 }
 0x812   :  { %919 = vadd.xlane.f32.xlu0 %v918_v28  ;;  %2673 = vmatprep.subr.bf16.mxu0 %v2961_v24 }
 0x815   :  { %2674 = vmatpush3.bf16.msra.mxu0 %v2962_v25  ;;  %v3550_v25 = vld [vmem:[%s3827_s3 + $0x4] sm:$0xf] }
 0x816   :  { %2813 = vmatprep.subr.bf16.mxu0 %v3096_v2 }
 0x897   :  { %v917_v29 = vpop.xlane.xlu1 %916 }
 0x898   :  { %v921_v30 = vmul.f32 0.015625, %v917_v29  ;;  %v971_v29 = vrot.slane %v962_v26, %v3278_v55 }
 0x89a   :  { %v923_v17 = vsub.f32 %v3402_v21, %v921_v30  ;;  %v967_v30 = vrot.slane %v962_v26, %v3268_v50 }
 0x89b   :  { %v920_v31 = vpop.xlane.xlu0 %919 }
 0x89c   :  { %v922_v32 = vmul.f32 0.015625, %v920_v31  ;;  %v925_v33 = vmul.f32 %v923_v17, %v923_v17 }
 0x89e   :  { %v924_v22 = vsub.f32 %v3407_v27, %v922_v32  ;;  %v927_v34 = vsel %vm102_vm3, %v925_v33, 0.0 }
 0x89f   :  { %928 = vadd.xlane.f32.xlu0 %v927_v34 }
 0x8a0   :  { %v926_v35 = vmul.f32 %v924_v22, %v924_v22 }
 0x8a2   :  { %v930_v36 = vsel %vm102_vm3, %v926_v35, 0.0 }
 0x8a3   :  { %931 = vadd.xlane.f32.xlu1 %v930_v36 }
 0x928   :  { %v929_v60 = vpop.xlane.xlu0 %928 }
 0x929   :  { %v933_v61 = vmul.f32 0.015625, %v929_v60 }
 0x92b   :  { %v935_v62 = vadd.f32 1e-05, %v933_v61 }
 0x92c   :  { %v932_v63 = vpop.xlane.xlu1 %931 }
 0x92d   :  { %3047 = vrsqrt.f32 %v935_v62  ;;  %v934_v1 = vmul.f32 0.015625, %v932_v63 }
 0x92f   :  { %v936_v3 = vadd.f32 1e-05, %v934_v1 }
 0x931   :  { %3049 = vrsqrt.f32 %v936_v3 }
 0x93a   :  { %v3048_v5 = vpop.eup %3047 }
 0x93b   :  { %v939_v6 = vmul.f32 %v3048_v5, %v923_v17 }
 0x93d   :  { %v945_v12 = vmul.f32 %v944_v7, %v939_v6 }
 0x93e   :  { %v3050_v10 = vpop.eup %3049 }
 0x93f   :  { %v940_v11 = vmul.f32 %v3050_v10, %v924_v22  ;;  %v951_v14 = vadd.f32 %v950_v20, %v945_v12  ;;  %v2963_v10 = vld [vmem:[%s3826_s4 + $0x70] ss:$8 sps:$4 sm:$0xff]   ;;  %v2966_v12 = vld [vmem:[%s3826_s4 + $0x60] ss:$8 sps:$4 sm:$0xff]  }
 0x941   :  { %v946_v13 = vmul.f32 %v944_v7, %v940_v11  ;;  %v2965_v7 = vld [vmem:[%s3826_s4 + $0x74] ss:$8 sps:$4 sm:$0xff]   ;;  %v2968_v11 = vld [vmem:[%s3826_s4 + $0x64] ss:$8 sps:$4 sm:$0xff]  }
 0x942   :  { %1358 = vmatprep.subr.bf16.mxu1 %v2965_v7 }
 0x943   :  { %v952_v15 = vadd.f32 %v950_v20, %v946_v13  ;;  %v2971_v20 = vld [vmem:[%s3826_s4 + $0x54] ss:$8 sps:$4 sm:$0xff]   ;;  %v2969_v13 = vld [vmem:[%s3826_s4 + $0x50] ss:$8 sps:$4 sm:$0xff]  }
 0x945   :  { %v953_v16 = vpack.c.bf16 %v952_v15, %v951_v14  ;;  %v2974_v14 = vld [vmem:[%s3826_s4 + $0x44] ss:$8 sps:$4 sm:$0xff]   ;;  %v2972_v15 = vld [vmem:[%s3826_s4 + $0x40] ss:$8 sps:$4 sm:$0xff]  }
 0x947   :  { %2497 = vmatmul.mubr.msk.bf16.vlgmr.msra.gmra.mxu1 %vm102_vm3, %v953_v16 }
 0x948   :  { %1382 = vmatprep.mubr.bf16.mxu1 %v3095_v0  ;;  %1359 = vmatpush1.bf16.msra.mxu1 %v2963_v10 }
 0x949   :  { %1360 = vmatprep.subr.bf16.mxu1 %v2968_v11 }
 0x94c   :  { %1361 = vmatpush1.bf16.msra.mxu1 %v2966_v12 }
 0x94d   :  { %1362 = vmatprep.subr.bf16.mxu1 %v2971_v20 }
 0x950   :  { %1363 = vmatpush1.bf16.msra.mxu1 %v2969_v13 }
 0x951   :  { %1364 = vmatprep.subr.bf16.mxu1 %v2974_v14 }
 0x954   :  { %1365 = vmatpush1.bf16.msra.mxu1 %v2972_v15 }
 0x955   :  { %2801 = vmatprep.subr.bf16.mxu1 %v3096_v2 }
 0xa07   :  { %v1051_v28 = vpop.f32.mrf.mxu1 }
 0xa08   :  { %v1052_v22 = vadd.f32 %v1051_v28, %v967_v30 }
 0xa09   :  { %v1053_v17 = vpop.f32.mrf.mxu1 }
 0xa0a   :  { %v1054_v32 = vadd.f32 %v1053_v17, %v971_v29  ;;  %v1060_v39 = vmax.f32 %v1052_v22, 0.0 }
 0xa0b   :  { %v1055_v31 = vpop.f32.mrf.mxu1 }
 0xa0c   :  { %v1056_v33 = vadd.f32 %v1055_v31, %v967_v30  ;;  %v1061_v38 = vmax.f32 %v1054_v32, 0.0  ;;  %v1281_v32 = vrot.slane %v3550_v25, %v3278_v55 }
 0xa0d   :  { %v1057_v34 = vpop.f32.mrf.mxu1 }
 0xa0e   :  { %v1058_v35 = vadd.f32 %v1057_v34, %v971_v29  ;;  %v1062_v36 = vmax.f32 %v1056_v33, 0.0  ;;  %v1275_v29 = vrot.slane %v3550_v25, %v3268_v50 }
 0xa10   :  { %v1063_v9 = vmax.f32 %v1058_v35, 0.0  ;;  %v1064_v42 = vpack.c.bf16 %v1062_v36, %v1060_v39  ;;  %v2524_v36 = vld [vmem:[%s3828_s5 + $0x2] sm:$0x3] }
 0xa12   :  { %v1065_v41 = vpack.c.bf16 %v1063_v9, %v1061_v38  ;;  %v1300_v9 = vrot.slane %v2524_v36, %v3268_v50 }
 0xa14   :  { %1233 = vmatprep.mubr.bf16.mxu0 %v1065_v41 }
 0xa15   :  { %1234 = vmatmul.mubr.bf16.vlgmr.msra.gmra.mxu0 %v1064_v42 }
 0xa16   :  { %2815 = vmatprep.mubr.msk.bf16.mxu0 %vm3097_vm0, %v3096_v2 }
 0xad5   :  { %v2675_v43 = vpop.f32.mrf.mxu0 }
 0xad7   :  { %v2676_v45 = vpop.f32.mrf.mxu0 }
 0xad8   :  { %v2677_v46 = vadd.f32 %v2676_v45, %v2675_v43 }
 0xad9   :  { %v2678_v47 = vpop.f32.mrf.mxu0 }
 0xada   :  { %v1236_v48 = vadd.f32 %v2677_v46, %v2498_v44 }
 0xadb   :  { %v2679_v52 = vpop.f32.mrf.mxu0 }
 0xadc   :  { %v3509_v53 = vadd.f32 %v1236_v48, %v3402_v21  ;;  %v2680_v54 = vadd.f32 %v2679_v52, %v2678_v47 }
 0xade   :  { %v1239_v56 = vadd.f32 %v2680_v54, %v2498_v44  ;;  %v1246_v57 = vsel %vm102_vm3, %v3509_v53, 0.0  ;;  %v1304_v54 = vrot.slane %v2524_v36, %v3278_v55 }
 0xadf   :  { %1247 = vadd.xlane.f32.xlu0 %v1246_v57 }
 0xae0   :  { %v3514_v58 = vadd.f32 %v1239_v56, %v3407_v27 }
 0xae2   :  { %v1249_v59 = vsel %vm102_vm3, %v3514_v58, 0.0 }
 0xae3   :  { %1250 = vadd.xlane.f32.xlu1 %v1249_v59 }
 0xb68   :  { %v1248_v60 = vpop.xlane.xlu0 %1247 }
 0xb69   :  { %v1252_v61 = vmul.f32 0.015625, %v1248_v60 }
 0xb6b   :  { %v1254_v62 = vsub.f32 %v3509_v53, %v1252_v61 }
 0xb6c   :  { %v1251_v63 = vpop.xlane.xlu1 %1250 }
 0xb6d   :  { %v1253_v21 = vmul.f32 0.015625, %v1251_v63  ;;  %v1256_v1 = vmul.f32 %v1254_v62, %v1254_v62 }
 0xb6f   :  { %v1255_v3 = vsub.f32 %v3514_v58, %v1253_v21  ;;  %v1258_v5 = vsel %vm102_vm3, %v1256_v1, 0.0 }
 0xb70   :  { %1259 = vadd.xlane.f32.xlu0 %v1258_v5 }
 0xb71   :  { %v1257_v6 = vmul.f32 %v1255_v3, %v1255_v3 }
 0xb73   :  { %v1261_v27 = vsel %vm102_vm3, %v1257_v6, 0.0 }
 0xb74   :  { %1262 = vadd.xlane.f32.xlu1 %v1261_v27 }
 0xbf9   :  { %v1260_v16 = vpop.xlane.xlu0 %1259 }
 0xbfa   :  { %v1264_v18 = vmul.f32 0.015625, %v1260_v16 }
 0xbfc   :  { %v1266_v19 = vadd.f32 1e-05, %v1264_v18 }
 0xbfd   :  { %v1263_v51 = vpop.xlane.xlu1 %1262 }
 0xbfe   :  { %3051 = vrsqrt.f32 %v1266_v19  ;;  %v1265_v23 = vmul.f32 0.015625, %v1263_v51 }
 0xc00   :  { %v1267_v24 = vadd.f32 1e-05, %v1265_v23 }
 0xc02   :  { %3053 = vrsqrt.f32 %v1267_v24 }
 0xc0b   :  { %v3052_v26 = vpop.eup %3051 }
 0xc0c   :  { %v1270_v28 = vmul.f32 %v3052_v26, %v1254_v62 }
 0xc0e   :  { %v1276_v31 = vmul.f32 %v1275_v29, %v1270_v28 }
 0xc0f   :  { %v3054_v30 = vpop.eup %3053 }
 0xc10   :  { %v1271_v17 = vmul.f32 %v3054_v30, %v1255_v3  ;;  %v1282_v22 = vadd.f32 %v1281_v32, %v1276_v31 }
 0xc12   :  { %v1277_v33 = vmul.f32 %v1275_v29, %v1271_v17 }
 0xc14   :  { %v1283_v34 = vadd.f32 %v1281_v32, %v1277_v33 }
 0xc16   :  { %v1284_v35 = vpack.c.bf16 %v1283_v34, %v1282_v22 }
 0xc18   :  { %2533 = vmatmul.mubr.msk.bf16.vlgmr.msra.gmra.mxu1 %vm102_vm3, %v1284_v35 }
 0xc19   :  { %2803 = vmatprep.mubr.msk.bf16.mxu1 %vm3097_vm0, %v3096_v2 }
 0xcd8   :  { %v1384_v38 = vpop.f32.mrf.mxu1 }
 0xcd9   :  { %v1385_v42 = vadd.f32 %v1384_v38, %v1300_v9 }
 0xcda   :  { %v1386_v39 = vpop.f32.mrf.mxu1 }
 0xcdb   :  { %v1387_v57 = vadd.f32 %v1386_v39, %v1304_v54 }
 0xcdc   :  { %v1388_v41 = vpop.f32.mrf.mxu1 }
 0xcdd   :  { %v1389_v43 = vadd.f32 %v1388_v41, %v1300_v9 }
 0xcde   :  { %v1390_v47 = vpop.f32.mrf.mxu1 }
 0xcdf   :  { %v1393_v44 = vpack.c.bf16 %v1389_v43, %v1385_v42  ;;  %v1391_v56 = vadd.f32 %v1390_v47, %v1304_v54 }
 0xce1   :  { %1514 = vrot.lane.b32.xlu1 %v1393_v44, %s3100_s20  ;;  %1396 = vrot.lane.b32.xlu0 %v1393_v44, %s3099_s19  ;;  %v3575_v60 = vpack.c.bf16 %v1391_v56, %v1387_v57 }
 0xce5   :  { %1512 = vrot.lane.b32.xlu1 %v1393_v44, %s3101_s21  ;;  %1636 = vrot.lane.b32.xlu0 %v1393_v44, %s3102_s22 }
 0xce9   :  { %1634 = vrot.lane.b32.xlu1 %v1393_v44, %s3098_s18  ;;  %1757 = vrot.lane.b32.xlu0 %v1393_v44, %s3103_s23 }
 0xced   :  { %1755 = vrot.lane.b32.xlu1 %v1393_v44, %s3104_s24 }
 0xd53   :  { %v1515_v45 = vpop.permute.xlu1 %1514  ;;  %v1397_v46 = vpop.permute.xlu0 %1396 }
 0xd54   :  { %v1520_v48 = vsel %vm316_vm4, %v1515_v45, 0  ;;  %v1402_v52 = vsel %vm316_vm4, %v1397_v46, 0 }
 0xd55   :  { %2802 = vmatpush3.bf16.xpose.msra.mxu1 %v1402_v52  ;;  %2814 = vmatpush3.bf16.xpose.msra.mxu0 %v1520_v48 }
 0xd56   :  { %2807 = vmatprep.subr.bf16.mxu1 %v3096_v2  ;;  %2825 = vmatprep.subr.bf16.mxu0 %v3096_v2 }
 0xd57   :  { %v1637_v59 = vpop.permute.xlu0 %1636  ;;  %v1513_v61 = vpop.permute.xlu1 %1512 }
 0xd58   :  { %v1642_v62 = vsel %vm316_vm4, %v1637_v59, 0 }
 0xd5b   :  { %v1758_v63 = vpop.permute.xlu0 %1757  ;;  %v1635_v21 = vpop.permute.xlu1 %1634 }
 0xd5c   :  { %2804 = vmatmul.mubr.msk.bf16.vlgmr.msra.gmra.mxu1 %vm316_vm4, %v1393_v44  ;;  %2816 = vmatmul.mubr.msk.bf16.vlgmr.msra.gmra.mxu0 %vm316_vm4, %v1513_v61  ;;  %v1763_v1 = vsel %vm316_vm4, %v1758_v63, 0 }
 0xd5d   :  { %2808 = vmatpush3.bf16.msra.mxu1 %v3575_v60  ;;  %2826 = vmatpush3.bf16.xpose.msra.mxu0 %v1642_v62 }
 0xd5e   :  { %2827 = vmatprep.mubr.msk.bf16.mxu0 %vm3097_vm0, %v3096_v2  ;;  %2837 = vmatprep.subr.bf16.mxu0 %v3096_v2 }
 0xd5f   :  { %2809 = vmatprep.mubr.msk.bf16.mxu1 %vm3097_vm0, %v3096_v2  ;;  %2819 = vmatprep.subr.bf16.mxu1 %v3096_v2  ;;  %v1756_v3 = vpop.permute.xlu1 %1755 }
 0xd64   :  { %2828 = vmatmul.mubr.msk.bf16.vlgmr.msra.gmra.mxu0 %vm316_vm4, %v1635_v21 }
 0xd65   :  { %2838 = vmatpush3.bf16.xpose.msra.mxu0 %v1763_v1  ;;  %2839 = vmatprep.mubr.msk.bf16.mxu0 %vm3097_vm0, %v3096_v2 }
 0xd66   :  { %2849 = vmatprep.subr.bf16.mxu0 %v3096_v2 }
 0xd6c   :  { %2840 = vmatmul.mubr.msk.bf16.vlgmr.msra.gmra.mxu0 %vm316_vm4, %v1756_v3 }
 0xd6d   :  { %2857 = vmatprep.mubr.msk.bf16.mxu0 %vm3097_vm0, %v3096_v2 }
 0xe1c   :  { %v1438_v5 = vpop.f32.mrf.mxu1  ;;  %v1556_v6 = vpop.f32.mrf.mxu0 }
 0xe1d   :  { %v1439_v27 = vadd.f32 %v1438_v5, %v3326_v37  ;;  %v3597_v11 = vadd.f32 %v1556_v6, %v3326_v37 }
 0xe1e   :  { %v2805_v7 = vpop.f32.mrf.mxu1  ;;  %v2817_v10 = vpop.f32.mrf.mxu0 }
 0xe1f   :  { %v1445_v12 = vsel %vm316_vm4, %v1439_v27, -inf  ;;  %v1563_v19 = vsel %vm316_vm4, %v3597_v11, -inf }
 0xe20   :  { %v1559_v20 = vpop.f32.mrf.mxu0  ;;  %1446 = vmax.xlane.f32.xlu0 %v1445_v12  ;;  %v1441_v13 = vpop.f32.mrf.mxu1 }
 0xe21   :  { %v1442_v14 = vadd.f32 %v1441_v13, %v3329_v40  ;;  %v1560_v18 = vadd.f32 %v1559_v20, %v3329_v40 }
 0xe22   :  { %v2806_v15 = vpop.f32.mrf.mxu1  ;;  %v2818_v16 = vpop.f32.mrf.mxu0 }
 0xe23   :  { %v1448_v51 = vsel %vm316_vm4, %v1442_v14, -inf  ;;  %v1566_v28 = vsel %vm316_vm4, %v1560_v18, -inf }
 0xe24   :  { %1564 = vmax.xlane.f32.xlu0 %v1563_v19  ;;  %1449 = vmax.xlane.f32.xlu1 %v1448_v51  ;;  %v1678_v23 = vpop.f32.mrf.mxu0 }
 0xe25   :  { %v3606_v24 = vadd.f32 %v1678_v23, %v3326_v37 }
 0xe26   :  { %v2829_v26 = vpop.f32.mrf.mxu0 }
 0xe27   :  { %v1685_v29 = vsel %vm316_vm4, %v3606_v24, -inf }
 0xe28   :  { %1567 = vmax.xlane.f32.xlu0 %v1566_v28  ;;  %1686 = vmax.xlane.f32.xlu1 %v1685_v29  ;;  %v1681_v30 = vpop.f32.mrf.mxu0 }
 0xe29   :  { %v1682_v17 = vadd.f32 %v1681_v30, %v3329_v40 }
 0xe2a   :  { %v2830_v31 = vpop.f32.mrf.mxu0 }
 0xe2b   :  { %v1688_v32 = vsel %vm316_vm4, %v1682_v17, -inf }
 0xe2c   :  { %1689 = vmax.xlane.f32.xlu0 %v1688_v32  ;;  %v1799_v33 = vpop.f32.mrf.mxu0 }
 0xe2d   :  { %v1800_v22 = vadd.f32 %v1799_v33, %v3326_v37 }
 0xe2e   :  { %v2841_v34 = vpop.f32.mrf.mxu0 }
 0xe2f   :  { %v1806_v35 = vsel %vm316_vm4, %v1800_v22, -inf }
 0xe30   :  { %1807 = vmax.xlane.f32.xlu1 %v1806_v35  ;;  %v1802_v36 = vpop.f32.mrf.mxu0 }
 0xe31   :  { %v1803_v38 = vadd.f32 %v1802_v36, %v3329_v40 }
 0xe32   :  { %v2842_v9 = vpop.f32.mrf.mxu0 }
 0xe33   :  { %v1809_v39 = vsel %vm316_vm4, %v1803_v38, -inf }
 0xe34   :  { %1810 = vmax.xlane.f32.xlu0 %v1809_v39 }
 0xea9   :  { %v1447_v41 = vpop.xlane.xlu0 %1446 }
 0xeaa   :  { %v1451_v42 = vsub.f32 %v1439_v27, %v1447_v41 }
 0xeac   :  { %v1453_v43 = vmul.f32 1.442695, %v1451_v42 }
 0xead   :  { %v1450_v44 = vpop.xlane.xlu1 %1449  ;;  %v1565_v45 = vpop.xlane.xlu0 %1564 }
 0xeae   :  { %3055 = vpow2.f32 %v1453_v43  ;;  %v1452_v46 = vsub.f32 %v1442_v14, %v1450_v44  ;;  %v1569_v12 = vsub.f32 %v3597_v11, %v1565_v45 }
 0xeb0   :  { %v1455_v47 = vmul.f32 1.442695, %v1452_v46  ;;  %v1571_v13 = vmul.f32 1.442695, %v1569_v12 }
 0xeb1   :  { %v1568_v37 = vpop.xlane.xlu0 %1567  ;;  %v1687_v20 = vpop.xlane.xlu1 %1686 }
 0xeb2   :  { %3057 = vpow2.f32 %v1455_v47  ;;  %v1570_v48 = vsub.f32 %v1560_v18, %v1568_v37  ;;  %v1691_v14 = vsub.f32 %v3606_v24, %v1687_v20 }
 0xeb4   :  { %v1573_v52 = vmul.f32 1.442695, %v1570_v48  ;;  %v1693_v16 = vmul.f32 1.442695, %v1691_v14 }
 0xeb5   :  { %v1690_v54 = vpop.xlane.xlu0 %1689 }
 0xeb6   :  { %v1692_v56 = vsub.f32 %v1682_v17, %v1690_v54  ;;  %3059 = vpow2.f32 %v1573_v52 }
 0xeb8   :  { %v1695_v40 = vmul.f32 1.442695, %v1692_v56 }
 0xeb9   :  { %v1808_v15 = vpop.xlane.xlu1 %1807 }
 0xeba   :  { %3061 = vpow2.f32 %v1695_v40  ;;  %v1812_v18 = vsub.f32 %v1800_v22, %v1808_v15  ;;  %v2978_v15 = vld [vmem:[%s3829_s6 + $0x20] sm:$0xff]  }
 0xebb   :  { %v3056_v57 = vpop.eup %3055 }
 0xebc   :  { %v1457_v59 = vsel %vm316_vm4, %v3056_v57, 0.0  ;;  %v1814_v19 = vmul.f32 1.442695, %v1812_v18 }
 0xebd   :  { %1458 = vadd.xlane.f32.xlu1 %v1457_v59  ;;  %v1811_v61 = vpop.xlane.xlu0 %1810 }
 0xebe   :  { %v1813_v62 = vsub.f32 %v1803_v38, %v1811_v61 }
 0xebf   :  { %v3058_v63 = vpop.eup %3057 }
 0xec0   :  { %v1816_v21 = vmul.f32 1.442695, %v1813_v62  ;;  %v1460_v1 = vsel %vm316_vm4, %v3058_v63, 0.0 }
 0xec1   :  { %1461 = vadd.xlane.f32.xlu0 %v1460_v1 }
 0xec2   :  { %3063 = vpow2.f32 %v1816_v21 }
 0xec3   :  { %v3060_v3 = vpop.eup %3059  ;;  %3065 = vpow2.f32 %v1571_v13 }
 0xec4   :  { %v1578_v5 = vsel %vm316_vm4, %v3060_v3, 0.0  ;;  %3067 = vpow2.f32 %v1693_v16 }
 0xec5   :  { %1579 = vadd.xlane.f32.xlu0 %v1578_v5  ;;  %3069 = vpow2.f32 %v1814_v19  ;;  %v2975_v5 = vld [vmem:[%s3829_s6 + $0x38] sm:$0xff]  }
 0xec6   :  { %2850 = vmatpush3.bf16.msra.mxu0 %v2975_v5  ;;  %v2979_v5 = vld [vmem:[%s3831_s8 + $0x70] ss:$8 sps:$4 sm:$0xff]  }
 0xec7   :  { %v3620_v6 = vpop.eup %3061  ;;  %2851 = vmatprep.subr.bf16.mxu0 %v3096_v2 }
 0xec8   :  { %v1700_v27 = vsel %vm316_vm4, %v3620_v6, 0.0 }
 0xec9   :  { %1701 = vadd.xlane.f32.xlu0 %v1700_v27 }
 0xece   :  { %1587 = vrot.lane.b32.xlu1 %v3575_v60, %s3101_s21 }
 0xecf   :  { %v3626_v7 = vpop.eup %3063 }
 0xed0   :  { %v1821_v10 = vsel %vm316_vm4, %v3626_v7, 0.0  ;;  %v3066_v51 = vpop.eup %3065 }
 0xed1   :  { %1822 = vadd.xlane.f32.xlu0 %v1821_v10  ;;  %v1575_v23 = vsel %vm316_vm4, %v3066_v51, 0.0  ;;  %v3068_v26 = vpop.eup %3067 }
 0xed2   :  { %v1697_v11 = vsel %vm316_vm4, %v3068_v26, 0.0  ;;  %v3070_v28 = vpop.eup %3069 }
 0xed3   :  { %v1818_v24 = vsel %vm316_vm4, %v3070_v28, 0.0 }
 0xee7   :  { %1708 = vrot.lane.b32.xlu0 %v3575_v60, %s3098_s18 }
 0xef2   :  { %1576 = vadd.xlane.f32.xlu1 %v1575_v23 }
 0xef6   :  { %1698 = vadd.xlane.f32.xlu1 %v1697_v11 }
 0xefa   :  { %1819 = vadd.xlane.f32.xlu1 %v1818_v24 }
 0xf0b   :  { %1829 = vrot.lane.b32.xlu1 %v3575_v60, %s3104_s24 }
 0xf46   :  { %v1459_v29 = vpop.xlane.xlu1 %1458 }
 0xf47   :  { %3071 = vrcp.f32 %v1459_v29 }
 0xf4a   :  { %v1462_v30 = vpop.xlane.xlu0 %1461  ;;  %v1588_v34 = vpop.permute.xlu1 %1587 }
 0xf4b   :  { %3073 = vrcp.f32 %v1462_v30 }
 0xf4e   :  { %v1580_v35 = vpop.xlane.xlu0 %1579 }
 0xf4f   :  { %3075 = vrcp.f32 %v1580_v35 }
 0xf52   :  { %v1702_v36 = vpop.xlane.xlu0 %1701 }
 0xf54   :  { %v3072_v17 = vpop.eup %3071 }
 0xf55   :  { %v1465_v32 = vmul.f32 %v3072_v17, %v3056_v57 }
 0xf58   :  { %v3074_v31 = vpop.eup %3073 }
 0xf59   :  { %v1466_v33 = vmul.f32 %v3074_v31, %v3058_v63 }
 0xf5a   :  { %v1823_v41 = vpop.xlane.xlu0 %1822 }
 0xf5b   :  { %v1467_v22 = vpack.c.bf16 %v1466_v33, %v1465_v32 }
 0xf5c   :  { %v3076_v39 = vpop.eup %3075 }
 0xf5d   :  { %2810 = vmatmul.mubr.msk.bf16.vlgmr.msra.gmra.mxu1 %vm316_vm4, %v1467_v22  ;;  %v1584_v44 = vmul.f32 %v3076_v39, %v3060_v3 }
 0xf5e   :  { %2820 = vmatpush3.bf16.msra.mxu1 %v1588_v34  ;;  %2821 = vmatprep.mubr.msk.bf16.mxu1 %vm3097_vm0, %v3096_v2  ;;  %v1709_v47 = vpop.permute.xlu0 %1708 }
 0xf5f   :  { %2831 = vmatprep.subr.bf16.mxu1 %v3096_v2 }
 0xf7b   :  { %v1577_v60 = vpop.xlane.xlu1 %1576 }
 0xf7c   :  { %3077 = vrcp.f32 %v1577_v60 }
 0xf7f   :  { %v1699_v38 = vpop.xlane.xlu1 %1698 }
 0xf80   :  { %3079 = vrcp.f32 %v1699_v38 }
 0xf81   :  { %3081 = vrcp.f32 %v1702_v36 }
 0xf83   :  { %v1820_v9 = vpop.xlane.xlu1 %1819 }
 0xf84   :  { %3083 = vrcp.f32 %v1820_v9 }
 0xf85   :  { %3085 = vrcp.f32 %v1823_v41 }
 0xf87   :  { %v1830_v40 = vpop.permute.xlu1 %1829 }
 0xf89   :  { %v3078_v42 = vpop.eup %3077 }
 0xf8a   :  { %v1583_v43 = vmul.f32 %v3078_v42, %v3066_v51 }
 0xf8c   :  { %v1585_v45 = vpack.c.bf16 %v1584_v44, %v1583_v43  ;;  %v2556_v43 = vld [vmem:[%s3830_s7 + $0x1] ss:$0 sm:$0xff] }
 0xf8d   :  { %v3080_v46 = vpop.eup %3079 }
 0xf8e   :  { %2822 = vmatmul.mubr.msk.bf16.vlgmr.msra.gmra.mxu1 %vm316_vm4, %v1585_v45  ;;  %v3082_v37 = vpop.eup %3081  ;;  %v1705_v48 = vmul.f32 %v3080_v46, %v3068_v26 }
 0xf8f   :  { %2832 = vmatpush3.bf16.msra.mxu1 %v1709_v47  ;;  %2833 = vmatprep.mubr.msk.bf16.mxu1 %vm3097_vm0, %v3096_v2  ;;  %v1706_v52 = vmul.f32 %v3082_v37, %v3620_v6 }
 0xf90   :  { %2843 = vmatprep.subr.bf16.mxu1 %v3096_v2 }
 0xf91   :  { %v1707_v54 = vpack.c.bf16 %v1706_v52, %v1705_v48  ;;  %v3084_v56 = vpop.eup %3083 }
 0xf92   :  { %v3086_v57 = vpop.eup %3085  ;;  %v1826_v59 = vmul.f32 %v3084_v56, %v3070_v28 }
 0xf93   :  { %v1827_v61 = vmul.f32 %v3086_v57, %v3626_v7  ;;  %v2976_v7 = vld [vmem:[%s3829_s6 + $0x30] sm:$0xff]  }
 0xf94   :  { %2852 = vmatpush3.bf16.msra.mxu0 %v2976_v7  ;;  %v2987_v7 = vld [vmem:[%s3831_s8 + $0x54] ss:$8 sps:$4 sm:$0xff]  }
 0xf95   :  { %v1828_v62 = vpack.c.bf16 %v1827_v61, %v1826_v59  ;;  %2853 = vmatprep.subr.bf16.mxu0 %v3096_v2 }
 0xf96   :  { %2834 = vmatmul.mubr.msk.bf16.vlgmr.msra.gmra.mxu1 %vm316_vm4, %v1707_v54 }
 0xf97   :  { %2844 = vmatpush3.bf16.msra.mxu1 %v1830_v40  ;;  %2845 = vmatprep.mubr.msk.bf16.mxu1 %vm3097_vm0, %v3096_v2 }
 0xf9e   :  { %2846 = vmatmul.mubr.msk.bf16.vlgmr.msra.gmra.mxu1 %vm316_vm4, %v1828_v62 }
 0xf9f   :  { %2132 = vmatprep.mubr.bf16.mxu1 %v3095_v0  ;;  %v2977_v0 = vld [vmem:[%s3829_s6 + $0x28] sm:$0xff]  }
 0xfa0   :  { %2854 = vmatpush3.bf16.msra.mxu0 %v2977_v0  ;;  %v2988_v0 = vld [vmem:[%s3831_s8 + $0x40] ss:$8 sps:$4 sm:$0xff]  }
 0xfa1   :  { %2855 = vmatprep.subr.bf16.mxu0 %v3096_v2 }
 0xfa4   :  { %2856 = vmatpush3.bf16.msra.mxu0 %v2978_v15  ;;  %v2994_v15 = vld [vmem:[%s3832_s10 + $0xb0] sm:$0xff]  }
0x101d   :  { %v1505_v63 = vpop.f32.mrf.mxu1 }
0x101f   :  { %v2811_v21 = vpop.f32.mrf.mxu1 }
0x1021   :  { %v1508_v1 = vpop.f32.mrf.mxu1 }
0x1023   :  { %v2812_v3 = vpop.f32.mrf.mxu1 }
0x1024   :  { %v2981_v3 = vld [vmem:[%s3831_s8 + $0x74] ss:$8 sps:$4 sm:$0xff]  }
0x1025   :  { %2108 = vmatprep.subr.bf16.mxu1 %v2981_v3 }
0x1026   :  { %2109 = vmatpush1.bf16.msra.mxu1 %v2979_v5 }
0x104e   :  { %v1627_v6 = vpop.f32.mrf.mxu1 }
0x1050   :  { %v2823_v27 = vpop.f32.mrf.mxu1 }
0x1051   :  { %v2982_v27 = vld [vmem:[%s3831_s8 + $0x60] ss:$8 sps:$4 sm:$0xff]  }
0x1052   :  { %v1630_v10 = vpop.f32.mrf.mxu1 }
0x1053   :  { %v2900_v12 = vpack.i.bf16 %v1630_v10, %v1627_v6  ;;  %v2984_v6 = vld [vmem:[%s3831_s8 + $0x64] ss:$8 sps:$4 sm:$0xff]   ;;  %v2985_v10 = vld [vmem:[%s3831_s8 + $0x50] ss:$8 sps:$4 sm:$0xff]  }
0x1054   :  { %v2824_v20 = vpop.f32.mrf.mxu1  ;;  %2110 = vmatprep.subr.bf16.mxu1 %v2984_v6 }
0x1055   :  { %2901 = vrot.lane.b32.xlu1 %v2900_v12, %s3103_s23  ;;  %2111 = vmatpush1.bf16.msra.mxu1 %v2982_v27  ;;  %v2990_v12 = vld [vmem:[%s3831_s8 + $0x44] ss:$8 sps:$4 sm:$0xff]   ;;  %v2991_v20 = vld [vmem:[%s3832_s10 + $0xf8] sm:$0xff]  }
0x1056   :  { %v1748_v13 = vpop.f32.mrf.mxu1  ;;  %2112 = vmatprep.subr.bf16.mxu1 %v2987_v7  ;;  %2702 = vmatprep.subr.bf16.mxu0 %v2991_v20 }
0x1058   :  { %v2835_v14 = vpop.f32.mrf.mxu1 }
0x1059   :  { %2113 = vmatpush1.bf16.msra.mxu1 %v2985_v10  ;;  %v2993_v14 = vld [vmem:[%s3832_s10 + $0xf0] sm:$0xff]  }
0x105a   :  { %v1751_v16 = vpop.f32.mrf.mxu1  ;;  %2114 = vmatprep.subr.bf16.mxu1 %v2990_v12 }
0x105b   :  { %v2905_v18 = vpack.i.bf16 %v1751_v16, %v1748_v13  ;;  %v2992_v13 = vld [vmem:[%s3832_s10 + $0xb8] sm:$0xff]   ;;  %v2995_v16 = vld [vmem:[%s3832_s10 + $0xe8] sm:$0xff]  }
0x105c   :  { %v2836_v19 = vpop.f32.mrf.mxu1 }
0x105d   :  { %2906 = vrot.lane.b32.xlu0 %v2905_v18, %s3102_s22  ;;  %2115 = vmatpush1.bf16.msra.mxu1 %v2988_v0  ;;  %v2996_v18 = vld [vmem:[%s3832_s10 + $0xa8] sm:$0xff]   ;;  %v2997_v19 = vld [vmem:[%s3832_s10 + $0xe0] sm:$0xff]  }
0x105e   :  { %v1869_v51 = vpop.f32.mrf.mxu1  ;;  %2861 = vmatprep.subr.bf16.mxu1 %v3096_v2 }
0x1060   :  { %v2847_v23 = vpop.f32.mrf.mxu1 }
0x1061   :  { %v2999_v23 = vld [vmem:[%s3832_s10 + $0xd8] sm:$0xff]  }
0x1062   :  { %v1872_v26 = vpop.f32.mrf.mxu1 }
0x1063   :  { %v2910_v11 = vpack.i.bf16 %v1872_v26, %v1869_v51  ;;  %v2998_v51 = vld [vmem:[%s3832_s10 + $0xa0] sm:$0xff]   ;;  %v3000_v26 = vld [vmem:[%s3832_s10 + $0x98] sm:$0xff]  }
0x1064   :  { %v2848_v28 = vpop.f32.mrf.mxu1 }
0x1065   :  { %2911 = vrot.lane.b32.xlu1 %v2910_v11, %s3100_s20 }
0x10c7   :  { %v2902_v24 = vpop.permute.xlu1 %2901 }
0x10c8   :  { %v2904_v30 = vunpack.i.h.bf16 %v2902_v24  ;;  %v2903_v17 = vunpack.i.l.bf16 %v2902_v24 }
0x10ca   :  { %v1901_v22 = vsel %vm316_vm4, %v1508_v1, %v2904_v30  ;;  %v1900_v34 = vsel %vm316_vm4, %v1505_v63, %v2903_v17 }
0x10cf   :  { %v2907_v29 = vpop.permute.xlu0 %2906 }
0x10d0   :  { %v2909_v31 = vunpack.i.h.bf16 %v2907_v29  ;;  %v2908_v32 = vunpack.i.l.bf16 %v2907_v29 }
0x10d2   :  { %v1903_v36 = vsel %vm821_vm11, %v1901_v22, %v2909_v31  ;;  %v1902_v38 = vsel %vm821_vm11, %v1900_v34, %v2908_v32 }
0x10d7   :  { %v2912_v33 = vpop.permute.xlu1 %2911 }
0x10d8   :  { %v2914_v35 = vunpack.i.h.bf16 %v2912_v33  ;;  %v2913_v60 = vunpack.i.l.bf16 %v2912_v33  ;;  %v2025_v33 = vrot.slane %v3550_v25, %v943_v4  ;;  %v3001_v4 = vld [vmem:[%s3832_s10 + $0xd0] sm:$0xff]  }
0x10da   :  { %v1905_v9 = vsel %vm824_vm12, %v1903_v36, %v2914_v35  ;;  %v1904_v39 = vsel %vm824_vm12, %v1902_v38, %v2913_v60  ;;  %v2031_v60 = vrot.slane %v3550_v25, %v949_v8  ;;  %v3004_v8 = vld [vmem:[%s3832_s10 + $0x88] sm:$0xff]   ;;  %v3005_v25 = vld [vmem:[%s3832_s10 + $0xc0] sm:$0xff]  }
0x10db   :  { %v1906_v41 = vpack.c.bf16 %v1905_v9, %v1904_v39 }
0x10dd   :  { %2858 = vmatmul.mubr.msk.bf16.vlgmr.msra.gmra.mxu0 %vm102_vm3, %v1906_v41  ;;  %v3002_v41 = vld [vmem:[%s3832_s10 + $0x90] sm:$0xff]  }
0x10de   :  { %2703 = vmatpush3.bf16.msra.mxu0 %v2992_v13 }
0x10df   :  { %2704 = vmatprep.subr.bf16.mxu0 %v2993_v14 }
0x10e2   :  { %2705 = vmatpush3.bf16.msra.mxu0 %v2994_v15 }
0x10e3   :  { %2706 = vmatprep.subr.bf16.mxu0 %v2995_v16 }
0x10e6   :  { %2707 = vmatpush3.bf16.msra.mxu0 %v2996_v18 }
0x10e7   :  { %2708 = vmatprep.subr.bf16.mxu0 %v2997_v19 }
0x10ea   :  { %2709 = vmatpush3.bf16.msra.mxu0 %v2998_v51 }
0x10eb   :  { %2710 = vmatprep.subr.bf16.mxu0 %v2999_v23 }
0x10ee   :  { %2711 = vmatpush3.bf16.msra.mxu0 %v3000_v26 }
0x10ef   :  { %2712 = vmatprep.subr.bf16.mxu0 %v3001_v4 }
0x10f2   :  { %2713 = vmatpush3.bf16.msra.mxu0 %v3002_v41 }
0x10f3   :  { %2714 = vmatprep.subr.bf16.mxu0 %v3003_v49 }
0x10f6   :  { %2715 = vmatpush3.bf16.msra.mxu0 %v3004_v8  ;;  %v2627_v8 = vld [vmem:[%s3837_s14] ss:$0 sm:$0xff] }
0x10f7   :  { %2716 = vmatprep.subr.bf16.mxu0 %v3005_v25 }
0x119d   :  { %v1977_v42 = vpop.f32.mrf.mxu0 }
0x119e   :  { %v1984_v44 = vadd.f32 %v1977_v42, %v3509_v53  ;;  %v3006_v42 = vld [vmem:[%s3832_s10 + $0x80] sm:$0xff]  }
0x119f   :  { %v2859_v45 = vpop.f32.mrf.mxu0  ;;  %2717 = vmatpush3.bf16.msra.mxu0 %v3006_v42 }
0x11a0   :  { %v3683_v46 = vadd.f32 %v2556_v43, %v1984_v44 }
0x11a1   :  { %v1980_v47 = vpop.f32.mrf.mxu0 }
0x11a2   :  { %v1985_v37 = vadd.f32 %v1980_v47, %v3514_v58  ;;  %v1996_v48 = vsel %vm102_vm3, %v3683_v46, 0.0 }
0x11a3   :  { %1997 = vadd.xlane.f32.xlu0 %v1996_v48  ;;  %v2860_v52 = vpop.f32.mrf.mxu0 }
0x11a4   :  { %v3688_v54 = vadd.f32 %v2556_v43, %v1985_v37  ;;  %v2565_v43 = vld [vmem:[%s3833_s9 + $0x2] sm:$0x3] }
0x11a5   :  { %v2054_v45 = vrot.slane %v2565_v43, %v3278_v55  ;;  %v2050_v47 = vrot.slane %v2565_v43, %v3268_v50  ;;  %v2608_v50 = vld [vmem:[%s3834_s11 + $0x1] ss:$0 sm:$0xff] }
0x11a6   :  { %v1999_v56 = vsel %vm102_vm3, %v3688_v54, 0.0 }
0x11a7   :  { %2000 = vadd.xlane.f32.xlu1 %v1999_v56 }
0x122c   :  { %v1998_v40 = vpop.xlane.xlu0 %1997 }
0x122d   :  { %v2002_v57 = vmul.f32 0.015625, %v1998_v40 }
0x122f   :  { %v2004_v53 = vsub.f32 %v3683_v46, %v2002_v57 }
0x1230   :  { %v2001_v59 = vpop.xlane.xlu1 %2000 }
0x1231   :  { %v2003_v61 = vmul.f32 0.015625, %v2001_v59  ;;  %v2006_v62 = vmul.f32 %v2004_v53, %v2004_v53 }
0x1233   :  { %v2005_v58 = vsub.f32 %v3688_v54, %v2003_v61  ;;  %v2008_v63 = vsel %vm102_vm3, %v2006_v62, 0.0 }
0x1234   :  { %2009 = vadd.xlane.f32.xlu0 %v2008_v63 }
0x1235   :  { %v2007_v21 = vmul.f32 %v2005_v58, %v2005_v58 }
0x1237   :  { %v2011_v1 = vsel %vm102_vm3, %v2007_v21, 0.0 }
0x1238   :  { %2012 = vadd.xlane.f32.xlu0 %v2011_v1 }
0x12bd   :  { %v2010_v11 = vpop.xlane.xlu0 %2009 }
0x12be   :  { %v2014_v28 = vmul.f32 0.015625, %v2010_v11 }
0x12c0   :  { %v2016_v24 = vadd.f32 1e-05, %v2014_v28  ;;  %v3008_v28 = vld [vmem:[%s3835_s13 + $0x10] sm:$0xff]  }
0x12c1   :  { %v2013_v29 = vpop.xlane.xlu0 %2012 }
0x12c2   :  { %3087 = vrsqrt.f32 %v2016_v24  ;;  %v2015_v30 = vmul.f32 0.015625, %v2013_v29  ;;  %v3009_v24 = vld [vmem:[%s3835_s13 + $0x8] sm:$0xff]   ;;  %v3010_v29 = vld [vmem:[%s3835_s13] sm:$0xff]  }
0x12c4   :  { %v2017_v17 = vadd.f32 1e-05, %v2015_v30 }
0x12c6   :  { %3089 = vrsqrt.f32 %v2017_v17 }
0x12cf   :  { %v3088_v31 = vpop.eup %3087 }
0x12d0   :  { %v2020_v32 = vmul.f32 %v3088_v31, %v2004_v53 }
0x12d2   :  { %v2026_v35 = vmul.f32 %v2025_v33, %v2020_v32 }
0x12d3   :  { %v3090_v22 = vpop.eup %3089 }
0x12d4   :  { %v2021_v34 = vmul.f32 %v3090_v22, %v2005_v58  ;;  %v2032_v38 = vadd.f32 %v2031_v60, %v2026_v35 }
0x12d6   :  { %v2027_v36 = vmul.f32 %v2025_v33, %v2021_v34 }
0x12d8   :  { %v2033_v9 = vadd.f32 %v2031_v60, %v2027_v36  ;;  %v2625_v60 = vld [vmem:[%s3836_s12] ss:$0 sm:$0xff] }
0x12da   :  { %v2034_v39 = vpack.c.bf16 %v2033_v9, %v2032_v38 }
0x12dc   :  { %2574 = vmatmul.mubr.msk.bf16.vlgmr.msra.gmra.mxu1 %vm102_vm3, %v2034_v39 }
0x12dd   :  { %2869 = vmatprep.mubr.msk.bf16.mxu1 %vm3097_vm0, %v3096_v2 }
0x139c   :  { %v2134_v44 = vpop.f32.mrf.mxu1 }
0x139d   :  { %v2135_v40 = vadd.f32 %v2134_v44, %v2050_v47 }
0x139e   :  { %v2136_v37 = vpop.f32.mrf.mxu1 }
0x139f   :  { %v2137_v52 = vadd.f32 %v2136_v37, %v2054_v45  ;;  %v2143_v58 = vmax.f32 %v2135_v40, 0.0 }
0x13a0   :  { %v2138_v48 = vpop.f32.mrf.mxu1 }
0x13a1   :  { %v2139_v56 = vadd.f32 %v2138_v48, %v2050_v47  ;;  %v2144_v61 = vmax.f32 %v2137_v52, 0.0 }
0x13a2   :  { %v2140_v57 = vpop.f32.mrf.mxu1 }
0x13a3   :  { %v2141_v53 = vadd.f32 %v2140_v57, %v2054_v45  ;;  %v2145_v59 = vmax.f32 %v2139_v56, 0.0 }
0x13a5   :  { %v2146_v62 = vmax.f32 %v2141_v53, 0.0  ;;  %v2147_v21 = vpack.c.bf16 %v2145_v59, %v2143_v58 }
0x13a7   :  { %v2148_v63 = vpack.c.bf16 %v2146_v62, %v2144_v61 }
0x13a9   :  { %2318 = vmatprep.mubr.bf16.mxu0 %v2148_v63 }
0x13aa   :  { %2319 = vmatmul.mubr.bf16.vlgmr.msra.gmra.mxu0 %v2147_v21 }
0x146a   :  { %v2718_v1 = vpop.f32.mrf.mxu0 }
0x146c   :  { %v2719_v55 = vpop.f32.mrf.mxu0 }
0x146d   :  { %v2720_v3 = vadd.f32 %v2719_v55, %v2718_v1 }
0x146e   :  { %v2721_v5 = vpop.f32.mrf.mxu0 }
0x146f   :  { %v2321_v6 = vadd.f32 %v2720_v3, %v2608_v50 }
0x1470   :  { %v2722_v27 = vpop.f32.mrf.mxu0 }
0x1471   :  { %v2723_v7 = vadd.f32 %v2722_v27, %v2721_v5  ;;  %v2327_v10 = vadd.f32 %v2321_v6, %v3683_v46 }
0x1473   :  { %v2324_v12 = vadd.f32 %v2723_v7, %v2608_v50  ;;  %v2331_v0 = vsel %vm102_vm3, %v2327_v10, 0.0 }
0x1474   :  { %2332 = vadd.xlane.f32.xlu1 %v2331_v0 }
0x1475   :  { %v2328_v20 = vadd.f32 %v2324_v12, %v3688_v54  ;;  %v3007_v54 = vld [vmem:[%s3835_s13 + $0x18] sm:$0xff]  }
0x1476   :  { %2862 = vmatpush3.bf16.msra.mxu1 %v3007_v54 }
0x1477   :  { %v2334_v13 = vsel %vm102_vm3, %v2328_v20, 0.0  ;;  %2863 = vmatprep.subr.bf16.mxu1 %v3096_v2 }
0x1478   :  { %2335 = vadd.xlane.f32.xlu0 %v2334_v13 }
0x147a   :  { %2864 = vmatpush3.bf16.msra.mxu1 %v3008_v28 }
0x147b   :  { %2865 = vmatprep.subr.bf16.mxu1 %v3096_v2 }
0x147e   :  { %2866 = vmatpush3.bf16.msra.mxu1 %v3009_v24 }
0x147f   :  { %2867 = vmatprep.subr.bf16.mxu1 %v3096_v2  ;;  %v2626_v2 = vld [vmem:[%s3836_s12 + $0x1] ss:$0 sm:$0xff] }
0x1482   :  { %2868 = vmatpush3.bf16.msra.mxu1 %v3010_v29 }
0x14fd   :  { %v2333_v14 = vpop.xlane.xlu1 %2332 }
0x14fe   :  { %v2337_v15 = vmul.f32 0.015625, %v2333_v14 }
0x1500   :  { %v2339_v16 = vsub.f32 %v2327_v10, %v2337_v15 }
0x1501   :  { %v2336_v18 = vpop.xlane.xlu0 %2335 }
0x1502   :  { %v2338_v19 = vmul.f32 0.015625, %v2336_v18  ;;  %v2341_v51 = vmul.f32 %v2339_v16, %v2339_v16 }
0x1504   :  { %v2340_v23 = vsub.f32 %v2328_v20, %v2338_v19  ;;  %v2343_v26 = vsel %vm102_vm3, %v2341_v51, 0.0 }
0x1505   :  { %2344 = vadd.xlane.f32.xlu1 %v2343_v26 }
0x1506   :  { %v2342_v46 = vmul.f32 %v2340_v23, %v2340_v23 }
0x1508   :  { %v2346_v11 = vsel %vm102_vm3, %v2342_v46, 0.0 }
0x1509   :  { %2347 = vadd.xlane.f32.xlu0 %v2346_v11 }
0x158e   :  { %v2345_v30 = vpop.xlane.xlu1 %2344 }
0x158f   :  { %v2349_v17 = vmul.f32 0.015625, %v2345_v30 }
0x1591   :  { %v2351_v31 = vadd.f32 1e-05, %v2349_v17 }
0x1592   :  { %v2348_v32 = vpop.xlane.xlu0 %2347 }
0x1593   :  { %3091 = vrsqrt.f32 %v2351_v31  ;;  %v2350_v33 = vmul.f32 0.015625, %v2348_v32 }
0x1595   :  { %v2352_v22 = vadd.f32 1e-05, %v2350_v33 }
0x1597   :  { %3093 = vrsqrt.f32 %v2352_v22 }
0x15a0   :  { %v3092_v34 = vpop.eup %3091 }
0x15a1   :  { %v2355_v35 = vmul.f32 %v3092_v34, %v2339_v16 }
0x15a3   :  { %v2361_v9 = vmul.f32 %v2625_v60, %v2355_v35 }
0x15a4   :  { %v3094_v36 = vpop.eup %3093 }
0x15a5   :  { %v2356_v38 = vmul.f32 %v3094_v36, %v2340_v23  ;;  %v2367_v4 = vadd.f32 %v2626_v2, %v2361_v9 }
0x15a7   :  { %v2362_v39 = vmul.f32 %v2625_v60, %v2356_v38 }
0x15a9   :  { %v2368_v41 = vadd.f32 %v2626_v2, %v2362_v39 }
0x15ab   :  { %v2369_v49 = vpack.c.bf16 %v2368_v41, %v2367_v4 }
0x15ad   :  { %2870 = vmatmul.mubr.msk.bf16.vlgmr.msra.gmra.mxu1 %vm102_vm3, %v2369_v49 }
0x166d   :  { %v2446_v25 = vpop.f32.mrf.mxu1 }
0x166e   :  { %v2447_v42 = vadd.f32 %v2627_v8, %v2446_v25 }
0x166f   :  { %v2871_v43 = vpop.f32.mrf.mxu1 }
0x1670   :  { %2453 = vst [vmem:[%s3838_s15] sm:$0xff] %v2447_v42 }
0x1671   :  { %v2449_v44 = vpop.f32.mrf.mxu1 }
0x1672   :  { %v2450_v45 = vadd.f32 %v2627_v8, %v2449_v44 }
0x1673   :  { %v2872_v47 = vpop.f32.mrf.mxu1 }
0x1674   :  { %2454 = vst [vmem:[%s3838_s15 + $0x8] sm:$0xff] %v2450_v45 }

</bundles_post_ra>
